<compile_context>
chip_gen: v7x
topology: tpu7x:2x2x1
jax: 0.10.0
libtpu: 0.0.40
codegen_flags: <defaults>
</compile_context>

<pallas_src>
import functools

import jax
import jax.numpy as jnp
from jax.experimental import pallas as pl
from jax.experimental.pallas import tpu as pltpu

_LANE = 128
_SUBLANE = 8


def _round_up(x, m):
    return ((x + m - 1) // m) * m


def _choose_time_chunk(T, max_chunk=32):
    """Pick a time-chunk size.

    Prefer the largest divisor of T <= max_chunk (no padding).  If T has no
    decent divisor (e.g. prime), pick ceil(T / ceil(T/max_chunk)) and let the
    kernel mask the (small) padded tail instead of degrading to chunk=1.
    """
    cand = max(c for c in range(1, min(T, max_chunk) + 1) if T % c == 0)
    if 2 * cand >= min(T, max_chunk):
        return cand
    n = -(-T // max_chunk)          # number of chunks
    return -(-T // n)               # ceil(T / n) <= max_chunk


def _pad_gate_cols(w, H, Hp):
    """(..., 4H) -> (..., 4Hp): zero-pad each of the 4 gate column blocks H -> Hp."""
    if Hp == H:
        return w
    lead = w.shape[:-1]
    w4 = w.reshape(lead + (4, H))
    w4 = jnp.pad(w4, [(0, 0)] * len(lead) + [(0, 0), (0, Hp - H)])
    return w4.reshape(lead + (4 * Hp,))


def _lstm_chunk_kernel(tgt0_ref, w_oh_ref, x_ref, w_ih_ref, bias_ref,
                       w_hh_ref, w_fc_ref, b_fc_ref,
                       out_ref, hn_ref, cn_ref,
                       pre_ref, hs_ref,
                       *, t_chunk, hidden_pad, seq_len, pad_time, unroll):
    """One grid step = one (batch block, time chunk).

    x_ref   : (t_chunk, Bb, I)   time-major input chunk
    pre_ref : (t_chunk*Bb, 4Hp)  VMEM slab for the fused input projection
    hs_ref  : (t_chunk*Bb, Hp)   VMEM slab of hidden states for the fused fc
    hn_ref / cn_ref : (Bb, Hp)   grid-resident carries (constant index over time)
    """
    Hp = hidden_pad
    Bb = hn_ref.shape[0]
    chunk = pl.program_id(1)

    # ---- initial state (first chunk of every batch block). Matches the
    # reference exactly: h0 = tanh(target[:,0,:] @ output_to_hidden);
    # c0 = tanh(h0)  (the reference's output_to_cell result is discarded).
    @pl.when(chunk == 0)
    def _():
        h0 = jnp.tanh(jnp.dot(tgt0_ref[...], w_oh_ref[...],
                              preferred_element_type=jnp.float32))
        hn_ref[...] = h0
        cn_ref[...] = jnp.tanh(h0)

    # ---- fused input projection for the whole chunk: one MXU matmul into a
    # lane/sublane-aligned VMEM slab (hides under the serial recurrence, and
    # removes the pre-gate HBM round trip).
    x_flat = x_ref[...].reshape(t_chunk * Bb, x_ref.shape[-1])
    pre_ref[...] = (jnp.dot(x_flat, w_ih_ref[...],
                            preferred_element_type=jnp.float32)
                    + bias_ref[...])

    mm_dtype = w_hh_ref.dtype

    def step(t, carry):
        h, c = carry
        row = pl.multiple_of(t * Bb, 8)            # whole-sublane-tile offsets
        gates = pre_ref[pl.ds(row, Bb), :] + jnp.dot(
            h.astype(mm_dtype), w_hh_ref[...],
            preferred_element_type=jnp.float32)
        i_g = jax.nn.sigmoid(gates[:, 0 * Hp:1 * Hp])
        f_g = jax.nn.sigmoid(gates[:, 1 * Hp:2 * Hp])
        g_g = jnp.tanh(gates[:, 2 * Hp:3 * Hp])
        o_g = jax.nn.sigmoid(gates[:, 3 * Hp:4 * Hp])
        c_new = f_g * c + i_g * g_g
        h_new = o_g * jnp.tanh(c_new)
        if pad_time:
            # Padded tail timesteps: freeze the carries (numerically exact).
            valid = (chunk * t_chunk + t) < seq_len
            h_new = jnp.where(valid, h_new, h)
            c_new = jnp.where(valid, c_new, c)
        hs_ref[pl.ds(row, Bb), :] = h_new          # lane-dense (Hp-wide) slab
        return h_new, c_new

    h_fin, c_fin = jax.lax.fori_loop(0, t_chunk, step,
                                     (hn_ref[...], cn_ref[...]), unroll=unroll)
    hn_ref[...] = h_fin
    cn_ref[...] = c_fin

    # ---- fused fc for the whole chunk: one MXU matmul + lane-dense stores.
    y = jnp.dot(hs_ref[...].astype(w_fc_ref.dtype), w_fc_ref[...],
                preferred_element_type=jnp.float32) + b_fc_ref[...]
    out_ref[...] = y.reshape(out_ref.shape).astype(out_ref.dtype)


def lstm_model_forward(x, target, params, *, time_chunk=None, batch_block=None,
                       use_bf16=False, single_buffer_weights=True,
                       unroll=None, max_time_chunk=32):
    """x: (B, T, I), target: (B, T_t, O). Returns (out, hn, cn) like the torch module."""
    B, T, I = x.shape
    O, H = params["w_oh"].shape
    Hp = _round_up(H, _LANE)                 # lane-pad hidden size (exact, zeros)
    Op = _round_up(O, _LANE)                 # lane-dense fc output
    G = 4 * Hp

    # ---- batch padding / blocking (sublane alignment; v7x 2nd-TC sharding) ----
    Bp = _round_up(B, _SUBLANE)
    if batch_block is None:
        if Bp >= 16:
            Bp = _round_up(Bp, 16)
            batch_block = Bp // 2            # shard batch across v7x's 2 TCs
        else:
            batch_block = Bp
    else:
        Bp = _round_up(Bp, batch_block)
    assert batch_block % _SUBLANE == 0 and Bp % batch_block == 0
    n_bb = Bp // batch_block

    # ---- time chunking (pad + in-kernel mask if T has no good divisor) ----
    if time_chunk is None:
        time_chunk = _choose_time_chunk(T, max_time_chunk)
    T_pad = _round_up(T, time_chunk)
    n_chunks = T_pad // time_chunk
    pad_time = (T_pad != T)
    if unroll is None:
        unroll = min(time_chunk, 8)          # avoid spilling the 64-vreg file

    f32 = jnp.float32
    w_dt = jnp.bfloat16 if use_bf16 else f32

    # ---- padded / transposed parameters (zero padding is numerically exact) ----
    w_oh_p = jnp.zeros((Op, Hp), f32).at[:O, :H].set(
        params["w_oh"].astype(f32)).astype(w_dt)
    w_ih_p = _pad_gate_cols(params["w_ih"].T.astype(f32), H, Hp).astype(w_dt)     # (I, G)
    w_hh_p = jnp.zeros((Hp, G), f32).at[:H, :].set(
        _pad_gate_cols(params["w_hh"].T.astype(f32), H, Hp)).astype(w_dt)         # (Hp, G)
    bias_p = _pad_gate_cols(
        (params["b_ih"] + params["b_hh"]).astype(f32)[None, :], H, Hp)            # (1, G) f32
    w_fc_p = jnp.zeros((Hp, Op), f32).at[:H, :O].set(
        params["w_fc"].T.astype(f32)).astype(w_dt)
    b_fc_p = jnp.zeros((1, Op), f32).at[0, :O].set(params["b_fc"].astype(f32))

    # ---- padded activations: time-major x (cheap; I-wide) and target[:,0,:] ----
    x_tm = jnp.zeros((T_pad, Bp, I), w_dt).at[:T, :B, :].set(
        jnp.transpose(x, (1, 0, 2)).astype(w_dt))
    tgt0 = jnp.zeros((Bp, Op), w_dt).at[:B, :O].set(target[:, 0, :].astype(w_dt))

    Bb, tc = batch_block, time_chunk

    def _const_spec(shape):
        idx = lambda b, c, _n=len(shape): (0,) * _n
        if single_buffer_weights:
            # Loop-invariant operands: no need for double buffering.
            return pl.BlockSpec(shape, idx, pipeline_mode=pl.Buffered(1))
        return pl.BlockSpec(shape, idx)

    grid_spec = pltpu.PrefetchScalarGridSpec(
        num_scalar_prefetch=0,
        grid=(n_bb, n_chunks),
        in_specs=[
            pl.BlockSpec((Bb, Op), lambda b, c: (b, 0)),           # target[:,0,:]
            _const_spec((Op, Hp)),                                 # output_to_hidden
            pl.BlockSpec((tc, Bb, I), lambda b, c: (c, b, 0)),     # x chunk (time-major)
            _const_spec((I, G)),                                   # W_ih^T (gate-padded)
            _const_spec((1, G)),                                   # b_ih + b_hh
            _const_spec((Hp, G)),                                  # W_hh^T (padded)
            _const_spec((Hp, Op)),                                 # W_fc^T (padded)
            _const_spec((1, Op)),                                  # b_fc
        ],
        out_specs=(
            pl.BlockSpec((tc, Bb, Op), lambda b, c: (c, b, 0)),    # fc output chunk
            pl.BlockSpec((Bb, Hp), lambda b, c: (b, 0)),           # h carry / h_n
            pl.BlockSpec((Bb, Hp), lambda b, c: (b, 0)),           # c carry / c_n
        ),
        scratch_shapes=[
            pltpu.VMEM((tc * Bb, G), jnp.float32),                 # pre-gates slab
            pltpu.VMEM((tc * Bb, Hp), jnp.float32),                # hidden-state slab
        ],
    )

    # ---- VMEM budget from the actual block sizes, with headroom.  Constant
    # (Buffered(1)) weights are counted once; streamed blocks twice. ----
    w_bytes = 2 if use_bf16 else 4
    f32b = 4
    const_bytes = ((Op * Hp + I * G + Hp * G + Hp * Op) * w_bytes
                   + (G + Op) * f32b)
    const_bytes *= 1 if single_buffer_weights else 2
    stream_bytes = 2 * (Bb * Op * w_bytes          # tgt0
                        + tc * Bb * I * w_bytes    # x chunk
                        + tc * Bb * Op * f32b      # out chunk
                        + 2 * Bb * Hp * f32b)      # h / c carries
    scratch_bytes = tc * Bb * (G + Hp) * f32b
    need = const_bytes + stream_bytes + scratch_bytes
    try:
        # >64 MiB is fine on v5e/v6e (128 MiB physical); keep headroom on v7x.
        cap = int(getattr(pltpu.get_tpu_info(), "vmem_capacity_bytes",
                          64 * 1024 * 1024))
    except Exception:  # hardware query only; does not mask kernel errors
        cap = 64 * 1024 * 1024
    vmem_limit = int(min(int(cap * 0.85),
                         max(16 * 1024 * 1024, need + need // 2)))

    kernel = functools.partial(_lstm_chunk_kernel, t_chunk=tc, hidden_pad=Hp,
                               seq_len=T, pad_time=pad_time, unroll=unroll)

    out_tm, hn_p, cn_p = pl.pallas_call(
        kernel,
        out_shape=(
            jax.ShapeDtypeStruct((T_pad, Bp, Op), jnp.float32),  # fc out (time-major, padded)
            jax.ShapeDtypeStruct((Bp, Hp), jnp.float32),         # h_n (padded)
            jax.ShapeDtypeStruct((Bp, Hp), jnp.float32),         # c_n (padded)
        ),
        grid_spec=grid_spec,
        compiler_params=pltpu.CompilerParams(
            dimension_semantics=("parallel", "arbitrary"),       # batch parallel, time serial
            vmem_limit_bytes=vmem_limit),
    )(tgt0, w_oh_p, x_tm, w_ih_p, bias_p, w_hh_p, w_fc_p, b_fc_p)

    out = jnp.transpose(out_tm[:T, :B, :O], (1, 0, 2))           # (B, T, O)
    hn = hn_p[:B, :H][None, :, :]                                # (num_layers=1, B, H)
    cn = cn_p[:B, :H][None, :, :]
    return out, hn, cn


def ref_forward(x, target, params):
    """Pure-JAX reference mirroring the PyTorch forward (eval-mode dropout)."""
    h = jnp.tanh(target[:, 0, :] @ params["w_oh"])
    c = jnp.tanh(h)                              # same quirk as the reference
    H = h.shape[-1]

    def step(carry, x_t):
        h, c = carry
        gates = (x_t @ params["w_ih"].T + params["b_ih"]
                 + h @ params["w_hh"].T + params["b_hh"])
        i_g = jax.nn.sigmoid(gates[:, 0 * H:1 * H])
        f_g = jax.nn.sigmoid(gates[:, 1 * H:2 * H])
        g_g = jnp.tanh(gates[:, 2 * H:3 * H])
        o_g = jax.nn.sigmoid(gates[:, 3 * H:4 * H])
        c_new = f_g * c + i_g * g_g
        h_new = o_g * jnp.tanh(c_new)
        return (h_new, c_new), h_new

    (hn, cn), hs = jax.lax.scan(step, (h, c), jnp.transpose(x, (1, 0, 2)))
    hs = jnp.transpose(hs, (1, 0, 2))            # (B, T, H)
    out = hs @ params["w_fc"].T + params["b_fc"]
    return out, hn[None], cn[None]


def make_params(key, input_size, hidden_size, output_size,
                init_weight_radius_scaling=1.0):
    ks = jax.random.split(key, 8)
    stdv = 1.0 / jnp.sqrt(hidden_size)
    stdv_hh = init_weight_radius_scaling / jnp.sqrt(hidden_size)
    u = lambda k, shape, s: jax.random.uniform(k, shape, jnp.float32, -s, s)
    return {
        "w_oh": u(ks[0], (output_size, hidden_size), stdv),   # output_to_hidden
        "w_oc": u(ks[1], (output_size, hidden_size), stdv),   # output_to_cell (unused, as in ref)
        "w_ih": u(ks[2], (4 * hidden_size, input_size), stdv),
        "w_hh": u(ks[3], (4 * hidden_size, hidden_size), stdv_hh),
        "b_ih": u(ks[4], (4 * hidden_size,), stdv),
        "b_hh": u(ks[5], (4 * hidden_size,), stdv),
        "w_fc": u(ks[6], (output_size, hidden_size), stdv),
        "b_fc": u(ks[7], (output_size,), stdv),
    }


if __name__ == "__main__":
    B, T, I, H, O = 2, 8, 8, 32, 4

    key = jax.random.PRNGKey(0)
    k_x, k_t, k_p = jax.random.split(key, 3)
    x = jax.random.normal(k_x, (B, T, I), dtype=jnp.float32)
    target = jax.random.normal(k_t, (B, T, O), dtype=jnp.float32)
    params = make_params(k_p, I, H, O)

    def run(single_buffer, use_bf16=False):
        fn = jax.jit(functools.partial(lstm_model_forward,
                                       single_buffer_weights=single_buffer,
                                       use_bf16=use_bf16))
        return jax.block_until_ready(fn(x, target, params))

    # Narrow fallback: only for builds that reject pipeline_mode=pl.Buffered(1).
    # A genuine kernel bug fails in BOTH paths and still surfaces from the
    # double-buffered attempt (nothing is silently swallowed).
    _FALLBACK_ERRORS = (pltpu.LoweringException, NotImplementedError, TypeError,
                        ValueError, getattr(jax.errors, "JaxRuntimeError", ValueError))
    try:
        out, hn, cn = run(True)
        single_buffer_ok = True
    except _FALLBACK_ERRORS:
        out, hn, cn = run(False)
        single_buffer_ok = False

    out_r, hn_r, cn_r = ref_forward(x, target, params)
    assert out.shape == (B, T, O) and hn.shape == (1, B, H) and cn.shape == (1, B, H)
    assert jnp.allclose(out, out_r, atol=1e-5), "out mismatch"
    assert jnp.allclose(hn, hn_r, atol=1e-5), "hn mismatch"
    assert jnp.allclose(cn, cn_r, atol=1e-5), "cn mismatch"

    # bf16-MXU variant (perf option): recurrence error compounds, so only a
    # loose sanity tolerance is checked here.
    out_b, _, _ = run(single_buffer_ok, use_bf16=True)
    assert jnp.allclose(out_b, out_r, atol=5e-2, rtol=5e-2), "bf16 out mismatch"

    print("KERNEL_OK")
</pallas_src>

<mosaic_0001>
module attributes {stable_mosaic.version = 11 : i64} {
  func.func @_lstm_chunk_kernel(%arg0: i32, %arg1: i32, %arg2: memref<8x128xf32, #tpu.memory_space<vmem>>, %arg3: memref<128x128xf32, #tpu.memory_space<vmem>>, %arg4: memref<8x8x8xf32, #tpu.memory_space<vmem>>, %arg5: memref<8x512xf32, #tpu.memory_space<vmem>>, %arg6: memref<1x512xf32, #tpu.memory_space<vmem>>, %arg7: memref<128x512xf32, #tpu.memory_space<vmem>>, %arg8: memref<128x128xf32, #tpu.memory_space<vmem>>, %arg9: memref<1x128xf32, #tpu.memory_space<vmem>>, %arg10: memref<8x8x128xf32, #tpu.memory_space<vmem>>, %arg11: memref<8x128xf32, #tpu.memory_space<vmem>>, %arg12: memref<8x128xf32, #tpu.memory_space<vmem>>, %arg13: memref<64x512xf32, #tpu.memory_space<vmem>>, %arg14: memref<64x128xf32, #tpu.memory_space<vmem>>) attributes {dimension_semantics = [#tpu.dimension_semantics<parallel>, #tpu.dimension_semantics<arbitrary>], iteration_bounds = array<i64: 1, 1>, scalar_prefetch = 0 : i64, scratch_operands = 2 : i64, tpu.core_type = #tpu.core_type<tc>, window_params = [{transform_indices = @transform_0, window_bounds = array<i64: 8, 128>}, {pipeline_mode = #tpu.pipeline_mode<synchronous>, transform_indices = @transform_1, window_bounds = array<i64: 128, 128>}, {transform_indices = @transform_2, window_bounds = array<i64: 8, 8, 8>}, {pipeline_mode = #tpu.pipeline_mode<synchronous>, transform_indices = @transform_3, window_bounds = array<i64: 8, 512>}, {pipeline_mode = #tpu.pipeline_mode<synchronous>, transform_indices = @transform_4, window_bounds = array<i64: 1, 512>}, {pipeline_mode = #tpu.pipeline_mode<synchronous>, transform_indices = @transform_5, window_bounds = array<i64: 128, 512>}, {pipeline_mode = #tpu.pipeline_mode<synchronous>, transform_indices = @transform_6, window_bounds = array<i64: 128, 128>}, {pipeline_mode = #tpu.pipeline_mode<synchronous>, transform_indices = @transform_7, window_bounds = array<i64: 1, 128>}, {transform_indices = @transform_8, window_bounds = array<i64: 8, 8, 128>}, {transform_indices = @transform_9, window_bounds = array<i64: 8, 128>}, {transform_indices = @transform_10, window_bounds = array<i64: 8, 128>}]} {
    %c0_i32 = arith.constant 0 : i32
    %0 = arith.cmpi eq, %arg1, %c0_i32 : i32
    %1 = arith.extui %0 : i1 to i32
    %c0_i32_0 = arith.constant 0 : i32
    %2 = arith.cmpi ne, %1, %c0_i32_0 : i32
    scf.if %2 {
      %c0_100 = arith.constant 0 : index
      %c0_101 = arith.constant 0 : index
      %295 = vector.load %arg2[%c0_100, %c0_101] : memref<8x128xf32, #tpu.memory_space<vmem>>, vector<8x128xf32>
      %c0_102 = arith.constant 0 : index
      %c0_103 = arith.constant 0 : index
      %296 = vector.load %arg3[%c0_102, %c0_103] : memref<128x128xf32, #tpu.memory_space<vmem>>, vector<128x128xf32>
      %cst_104 = arith.constant dense<0.000000e+00> : vector<8x128xf32>
      %297 = tpu.matmul %295, %296, %cst_104 {dimension_numbers = #tpu.dot_dimension_numbers<[1], [0], [0], [1], [0, 0, 1, 1], [], []>} : vector<8x128xf32>, vector<128x128xf32>, vector<8x128xf32> -> vector<8x128xf32>
      %298 = math.tanh %297 : vector<8x128xf32>
      %c0_105 = arith.constant 0 : index
      %c0_106 = arith.constant 0 : index
      %299 = vector.load %arg11[%c0_105, %c0_106] : memref<8x128xf32, #tpu.memory_space<vmem>>, vector<8x128xf32>
      tpu.vector_store %arg11[%c0_105, %c0_106], %298 {strides = array<i32>} : memref<8x128xf32, #tpu.memory_space<vmem>>, vector<8x128xf32>,
      %300 = math.tanh %298 : vector<8x128xf32>
      %c0_107 = arith.constant 0 : index
      %c0_108 = arith.constant 0 : index
      %301 = vector.load %arg12[%c0_107, %c0_108] : memref<8x128xf32, #tpu.memory_space<vmem>>, vector<8x128xf32>
      tpu.vector_store %arg12[%c0_107, %c0_108], %300 {strides = array<i32>} : memref<8x128xf32, #tpu.memory_space<vmem>>, vector<8x128xf32>,
    } else {
    }
    %c0 = arith.constant 0 : index
    %c0_1 = arith.constant 0 : index
    %c0_2 = arith.constant 0 : index
    %3 = vector.load %arg4[%c0, %c0_1, %c0_2] : memref<8x8x8xf32, #tpu.memory_space<vmem>>, vector<8x8x8xf32>
    %4 = vector.shape_cast %3 : vector<8x8x8xf32> to vector<64x8xf32>
    %c0_3 = arith.constant 0 : index
    %c0_4 = arith.constant 0 : index
    %5 = vector.load %arg5[%c0_3, %c0_4] : memref<8x512xf32, #tpu.memory_space<vmem>>, vector<8x512xf32>
    %cst = arith.constant dense<0.000000e+00> : vector<64x512xf32>
    %6 = tpu.matmul %4, %5, %cst {dimension_numbers = #tpu.dot_dimension_numbers<[1], [0], [0], [1], [0, 0, 1, 1], [], []>} : vector<64x8xf32>, vector<8x512xf32>, vector<64x512xf32> -> vector<64x512xf32>
    %c0_5 = arith.constant 0 : index
    %c0_6 = arith.constant 0 : index
    %7 = vector.load %arg6[%c0_5, %c0_6] : memref<1x512xf32, #tpu.memory_space<vmem>>, vector<1x512xf32>
    %8 = vector.broadcast %7 : vector<1x512xf32> to vector<64x512xf32>
    %9 = arith.addf %6, %8 : vector<64x512xf32>
    %c0_7 = arith.constant 0 : index
    %c0_8 = arith.constant 0 : index
    %10 = vector.load %arg13[%c0_7, %c0_8] : memref<64x512xf32, #tpu.memory_space<vmem>>, vector<64x512xf32>
    tpu.vector_store %arg13[%c0_7, %c0_8], %9 {strides = array<i32>} : memref<64x512xf32, #tpu.memory_space<vmem>>, vector<64x512xf32>,
    %c0_9 = arith.constant 0 : index
    %c0_10 = arith.constant 0 : index
    %11 = vector.load %arg11[%c0_9, %c0_10] : memref<8x128xf32, #tpu.memory_space<vmem>>, vector<8x128xf32>
    %c0_11 = arith.constant 0 : index
    %c0_12 = arith.constant 0 : index
    %12 = vector.load %arg12[%c0_11, %c0_12] : memref<8x128xf32, #tpu.memory_space<vmem>>, vector<8x128xf32>
    %c0_i32_13 = arith.constant 0 : i32
    %c8_i32 = arith.constant 8 : i32
    %13 = arith.muli %c0_i32_13, %c8_i32 : i32
    %14 = tpu.assume_multiple %13, 8 : i32
    %15 = arith.index_cast %14 : i32 to index
    %c0_14 = arith.constant 0 : index
    %16 = vector.load %arg13[%15, %c0_14] : memref<64x512xf32, #tpu.memory_space<vmem>>, vector<8x512xf32>
    %c0_15 = arith.constant 0 : index
    %c0_16 = arith.constant 0 : index
    %17 = vector.load %arg7[%c0_15, %c0_16] : memref<128x512xf32, #tpu.memory_space<vmem>>, vector<128x512xf32>
    %cst_17 = arith.constant dense<0.000000e+00> : vector<8x512xf32>
    %18 = tpu.matmul %11, %17, %cst_17 {dimension_numbers = #tpu.dot_dimension_numbers<[1], [0], [0], [1], [0, 0, 1, 1], [], []>} : vector<8x128xf32>, vector<128x512xf32>, vector<8x512xf32> -> vector<8x512xf32>
    %19 = arith.addf %16, %18 : vector<8x512xf32>
    %20 = vector.extract_strided_slice %19 {offsets = [0, 0], sizes = [8, 128], strides = [1, 1]} : vector<8x512xf32> to vector<8x128xf32>
    %21 = arith.negf %20 : vector<8x128xf32>
    %22 = math.exp %21 : vector<8x128xf32>
    %cst_18 = arith.constant 1.000000e+00 : f32
    %23 = vector.broadcast %cst_18 : f32 to vector<8x128xf32>
    %24 = arith.addf %23, %22 : vector<8x128xf32>
    %25 = arith.divf %23, %24 : vector<8x128xf32>
    %26 = vector.extract_strided_slice %19 {offsets = [0, 128], sizes = [8, 128], strides = [1, 1]} : vector<8x512xf32> to vector<8x128xf32>
    %27 = arith.negf %26 : vector<8x128xf32>
    %28 = math.exp %27 : vector<8x128xf32>
    %cst_19 = arith.constant 1.000000e+00 : f32
    %29 = vector.broadcast %cst_19 : f32 to vector<8x128xf32>
    %30 = arith.addf %29, %28 : vector<8x128xf32>
    %31 = arith.divf %29, %30 : vector<8x128xf32>
    %32 = vector.extract_strided_slice %19 {offsets = [0, 256], sizes = [8, 128], strides = [1, 1]} : vector<8x512xf32> to vector<8x128xf32>
    %33 = math.tanh %32 : vector<8x128xf32>
    %34 = vector.extract_strided_slice %19 {offsets = [0, 384], sizes = [8, 128], strides = [1, 1]} : vector<8x512xf32> to vector<8x128xf32>
    %35 = arith.negf %34 : vector<8x128xf32>
    %36 = math.exp %35 : vector<8x128xf32>
    %cst_20 = arith.constant 1.000000e+00 : f32
    %37 = vector.broadcast %cst_20 : f32 to vector<8x128xf32>
    %38 = arith.addf %37, %36 : vector<8x128xf32>
    %39 = arith.divf %37, %38 : vector<8x128xf32>
    %40 = arith.mulf %31, %12 : vector<8x128xf32>
    %41 = arith.mulf %25, %33 : vector<8x128xf32>
    %42 = arith.addf %40, %41 : vector<8x128xf32>
    %43 = math.tanh %42 : vector<8x128xf32>
    %44 = arith.mulf %39, %43 : vector<8x128xf32>
    %45 = arith.index_cast %14 : i32 to index
    %c0_21 = arith.constant 0 : index
    %46 = vector.load %arg14[%45, %c0_21] : memref<64x128xf32, #tpu.memory_space<vmem>>, vector<8x128xf32>
    tpu.vector_store %arg14[%45, %c0_21], %44 {strides = array<i32>} : memref<64x128xf32, #tpu.memory_space<vmem>>, vector<8x128xf32>,
    %c1_i32 = arith.constant 1 : i32
    %c8_i32_22 = arith.constant 8 : i32
    %47 = arith.muli %c1_i32, %c8_i32_22 : i32
    %48 = tpu.assume_multiple %47, 8 : i32
    %49 = arith.index_cast %48 : i32 to index
    %c0_23 = arith.constant 0 : index
    %50 = vector.load %arg13[%49, %c0_23] : memref<64x512xf32, #tpu.memory_space<vmem>>, vector<8x512xf32>
    %c0_24 = arith.constant 0 : index
    %c0_25 = arith.constant 0 : index
    %51 = vector.load %arg7[%c0_24, %c0_25] : memref<128x512xf32, #tpu.memory_space<vmem>>, vector<128x512xf32>
    %cst_26 = arith.constant dense<0.000000e+00> : vector<8x512xf32>
    %52 = tpu.matmul %44, %51, %cst_26 {dimension_numbers = #tpu.dot_dimension_numbers<[1], [0], [0], [1], [0, 0, 1, 1], [], []>} : vector<8x128xf32>, vector<128x512xf32>, vector<8x512xf32> -> vector<8x512xf32>
    %53 = arith.addf %50, %52 : vector<8x512xf32>
    %54 = vector.extract_strided_slice %53 {offsets = [0, 0], sizes = [8, 128], strides = [1, 1]} : vector<8x512xf32> to vector<8x128xf32>
    %55 = arith.negf %54 : vector<8x128xf32>
    %56 = math.exp %55 : vector<8x128xf32>
    %cst_27 = arith.constant 1.000000e+00 : f32
    %57 = vector.broadcast %cst_27 : f32 to vector<8x128xf32>
    %58 = arith.addf %57, %56 : vector<8x128xf32>
    %59 = arith.divf %57, %58 : vector<8x128xf32>
    %60 = vector.extract_strided_slice %53 {offsets = [0, 128], sizes = [8, 128], strides = [1, 1]} : vector<8x512xf32> to vector<8x128xf32>
    %61 = arith.negf %60 : vector<8x128xf32>
    %62 = math.exp %61 : vector<8x128xf32>
    %cst_28 = arith.constant 1.000000e+00 : f32
    %63 = vector.broadcast %cst_28 : f32 to vector<8x128xf32>
    %64 = arith.addf %63, %62 : vector<8x128xf32>
    %65 = arith.divf %63, %64 : vector<8x128xf32>
    %66 = vector.extract_strided_slice %53 {offsets = [0, 256], sizes = [8, 128], strides = [1, 1]} : vector<8x512xf32> to vector<8x128xf32>
    %67 = math.tanh %66 : vector<8x128xf32>
    %68 = vector.extract_strided_slice %53 {offsets = [0, 384], sizes = [8, 128], strides = [1, 1]} : vector<8x512xf32> to vector<8x128xf32>
    %69 = arith.negf %68 : vector<8x128xf32>
    %70 = math.exp %69 : vector<8x128xf32>
    %cst_29 = arith.constant 1.000000e+00 : f32
    %71 = vector.broadcast %cst_29 : f32 to vector<8x128xf32>
    %72 = arith.addf %71, %70 : vector<8x128xf32>
    %73 = arith.divf %71, %72 : vector<8x128xf32>
    %74 = arith.mulf %65, %42 : vector<8x128xf32>
    %75 = arith.mulf %59, %67 : vector<8x128xf32>
    %76 = arith.addf %74, %75 : vector<8x128xf32>
    %77 = math.tanh %76 : vector<8x128xf32>
    %78 = arith.mulf %73, %77 : vector<8x128xf32>
    %79 = arith.index_cast %48 : i32 to index
    %c0_30 = arith.constant 0 : index
    %80 = vector.load %arg14[%79, %c0_30] : memref<64x128xf32, #tpu.memory_space<vmem>>, vector<8x128xf32>
    tpu.vector_store %arg14[%79, %c0_30], %78 {strides = array<i32>} : memref<64x128xf32, #tpu.memory_space<vmem>>, vector<8x128xf32>,
    %c2_i32 = arith.constant 2 : i32
    %c8_i32_31 = arith.constant 8 : i32
    %81 = arith.muli %c2_i32, %c8_i32_31 : i32
    %82 = tpu.assume_multiple %81, 8 : i32
    %83 = arith.index_cast %82 : i32 to index
    %c0_32 = arith.constant 0 : index
    %84 = vector.load %arg13[%83, %c0_32] : memref<64x512xf32, #tpu.memory_space<vmem>>, vector<8x512xf32>
    %c0_33 = arith.constant 0 : index
    %c0_34 = arith.constant 0 : index
    %85 = vector.load %arg7[%c0_33, %c0_34] : memref<128x512xf32, #tpu.memory_space<vmem>>, vector<128x512xf32>
    %cst_35 = arith.constant dense<0.000000e+00> : vector<8x512xf32>
    %86 = tpu.matmul %78, %85, %cst_35 {dimension_numbers = #tpu.dot_dimension_numbers<[1], [0], [0], [1], [0, 0, 1, 1], [], []>} : vector<8x128xf32>, vector<128x512xf32>, vector<8x512xf32> -> vector<8x512xf32>
    %87 = arith.addf %84, %86 : vector<8x512xf32>
    %88 = vector.extract_strided_slice %87 {offsets = [0, 0], sizes = [8, 128], strides = [1, 1]} : vector<8x512xf32> to vector<8x128xf32>
    %89 = arith.negf %88 : vector<8x128xf32>
    %90 = math.exp %89 : vector<8x128xf32>
    %cst_36 = arith.constant 1.000000e+00 : f32
    %91 = vector.broadcast %cst_36 : f32 to vector<8x128xf32>
    %92 = arith.addf %91, %90 : vector<8x128xf32>
    %93 = arith.divf %91, %92 : vector<8x128xf32>
    %94 = vector.extract_strided_slice %87 {offsets = [0, 128], sizes = [8, 128], strides = [1, 1]} : vector<8x512xf32> to vector<8x128xf32>
    %95 = arith.negf %94 : vector<8x128xf32>
    %96 = math.exp %95 : vector<8x128xf32>
    %cst_37 = arith.constant 1.000000e+00 : f32
    %97 = vector.broadcast %cst_37 : f32 to vector<8x128xf32>
    %98 = arith.addf %97, %96 : vector<8x128xf32>
    %99 = arith.divf %97, %98 : vector<8x128xf32>
    %100 = vector.extract_strided_slice %87 {offsets = [0, 256], sizes = [8, 128], strides = [1, 1]} : vector<8x512xf32> to vector<8x128xf32>
    %101 = math.tanh %100 : vector<8x128xf32>
    %102 = vector.extract_strided_slice %87 {offsets = [0, 384], sizes = [8, 128], strides = [1, 1]} : vector<8x512xf32> to vector<8x128xf32>
    %103 = arith.negf %102 : vector<8x128xf32>
    %104 = math.exp %103 : vector<8x128xf32>
    %cst_38 = arith.constant 1.000000e+00 : f32
    %105 = vector.broadcast %cst_38 : f32 to vector<8x128xf32>
    %106 = arith.addf %105, %104 : vector<8x128xf32>
    %107 = arith.divf %105, %106 : vector<8x128xf32>
    %108 = arith.mulf %99, %76 : vector<8x128xf32>
    %109 = arith.mulf %93, %101 : vector<8x128xf32>
    %110 = arith.addf %108, %109 : vector<8x128xf32>
    %111 = math.tanh %110 : vector<8x128xf32>
    %112 = arith.mulf %107, %111 : vector<8x128xf32>
    %113 = arith.index_cast %82 : i32 to index
    %c0_39 = arith.constant 0 : index
    %114 = vector.load %arg14[%113, %c0_39] : memref<64x128xf32, #tpu.memory_space<vmem>>, vector<8x128xf32>
    tpu.vector_store %arg14[%113, %c0_39], %112 {strides = array<i32>} : memref<64x128xf32, #tpu.memory_space<vmem>>, vector<8x128xf32>,
    %c3_i32 = arith.constant 3 : i32
    %c8_i32_40 = arith.constant 8 : i32
    %115 = arith.muli %c3_i32, %c8_i32_40 : i32
    %116 = tpu.assume_multiple %115, 8 : i32
    %117 = arith.index_cast %116 : i32 to index
    %c0_41 = arith.constant 0 : index
    %118 = vector.load %arg13[%117, %c0_41] : memref<64x512xf32, #tpu.memory_space<vmem>>, vector<8x512xf32>
    %c0_42 = arith.constant 0 : index
    %c0_43 = arith.constant 0 : index
    %119 = vector.load %arg7[%c0_42, %c0_43] : memref<128x512xf32, #tpu.memory_space<vmem>>, vector<128x512xf32>
    %cst_44 = arith.constant dense<0.000000e+00> : vector<8x512xf32>
    %120 = tpu.matmul %112, %119, %cst_44 {dimension_numbers = #tpu.dot_dimension_numbers<[1], [0], [0], [1], [0, 0, 1, 1], [], []>} : vector<8x128xf32>, vector<128x512xf32>, vector<8x512xf32> -> vector<8x512xf32>
    %121 = arith.addf %118, %120 : vector<8x512xf32>
    %122 = vector.extract_strided_slice %121 {offsets = [0, 0], sizes = [8, 128], strides = [1, 1]} : vector<8x512xf32> to vector<8x128xf32>
    %123 = arith.negf %122 : vector<8x128xf32>
    %124 = math.exp %123 : vector<8x128xf32>
    %cst_45 = arith.constant 1.000000e+00 : f32
    %125 = vector.broadcast %cst_45 : f32 to vector<8x128xf32>
    %126 = arith.addf %125, %124 : vector<8x128xf32>
    %127 = arith.divf %125, %126 : vector<8x128xf32>
    %128 = vector.extract_strided_slice %121 {offsets = [0, 128], sizes = [8, 128], strides = [1, 1]} : vector<8x512xf32> to vector<8x128xf32>
    %129 = arith.negf %128 : vector<8x128xf32>
    %130 = math.exp %129 : vector<8x128xf32>
    %cst_46 = arith.constant 1.000000e+00 : f32
    %131 = vector.broadcast %cst_46 : f32 to vector<8x128xf32>
    %132 = arith.addf %131, %130 : vector<8x128xf32>
    %133 = arith.divf %131, %132 : vector<8x128xf32>
    %134 = vector.extract_strided_slice %121 {offsets = [0, 256], sizes = [8, 128], strides = [1, 1]} : vector<8x512xf32> to vector<8x128xf32>
    %135 = math.tanh %134 : vector<8x128xf32>
    %136 = vector.extract_strided_slice %121 {offsets = [0, 384], sizes = [8, 128], strides = [1, 1]} : vector<8x512xf32> to vector<8x128xf32>
    %137 = arith.negf %136 : vector<8x128xf32>
    %138 = math.exp %137 : vector<8x128xf32>
    %cst_47 = arith.constant 1.000000e+00 : f32
    %139 = vector.broadcast %cst_47 : f32 to vector<8x128xf32>
    %140 = arith.addf %139, %138 : vector<8x128xf32>
    %141 = arith.divf %139, %140 : vector<8x128xf32>
    %142 = arith.mulf %133, %110 : vector<8x128xf32>
    %143 = arith.mulf %127, %135 : vector<8x128xf32>
    %144 = arith.addf %142, %143 : vector<8x128xf32>
    %145 = math.tanh %144 : vector<8x128xf32>
    %146 = arith.mulf %141, %145 : vector<8x128xf32>
    %147 = arith.index_cast %116 : i32 to index
    %c0_48 = arith.constant 0 : index
    %148 = vector.load %arg14[%147, %c0_48] : memref<64x128xf32, #tpu.memory_space<vmem>>, vector<8x128xf32>
    tpu.vector_store %arg14[%147, %c0_48], %146 {strides = array<i32>} : memref<64x128xf32, #tpu.memory_space<vmem>>, vector<8x128xf32>,
    %c4_i32 = arith.constant 4 : i32
    %c8_i32_49 = arith.constant 8 : i32
    %149 = arith.muli %c4_i32, %c8_i32_49 : i32
    %150 = tpu.assume_multiple %149, 8 : i32
    %151 = arith.index_cast %150 : i32 to index
    %c0_50 = arith.constant 0 : index
    %152 = vector.load %arg13[%151, %c0_50] : memref<64x512xf32, #tpu.memory_space<vmem>>, vector<8x512xf32>
    %c0_51 = arith.constant 0 : index
    %c0_52 = arith.constant 0 : index
    %153 = vector.load %arg7[%c0_51, %c0_52] : memref<128x512xf32, #tpu.memory_space<vmem>>, vector<128x512xf32>
    %cst_53 = arith.constant dense<0.000000e+00> : vector<8x512xf32>
    %154 = tpu.matmul %146, %153, %cst_53 {dimension_numbers = #tpu.dot_dimension_numbers<[1], [0], [0], [1], [0, 0, 1, 1], [], []>} : vector<8x128xf32>, vector<128x512xf32>, vector<8x512xf32> -> vector<8x512xf32>
    %155 = arith.addf %152, %154 : vector<8x512xf32>
    %156 = vector.extract_strided_slice %155 {offsets = [0, 0], sizes = [8, 128], strides = [1, 1]} : vector<8x512xf32> to vector<8x128xf32>
    %157 = arith.negf %156 : vector<8x128xf32>
    %158 = math.exp %157 : vector<8x128xf32>
    %cst_54 = arith.constant 1.000000e+00 : f32
    %159 = vector.broadcast %cst_54 : f32 to vector<8x128xf32>
    %160 = arith.addf %159, %158 : vector<8x128xf32>
    %161 = arith.divf %159, %160 : vector<8x128xf32>
    %162 = vector.extract_strided_slice %155 {offsets = [0, 128], sizes = [8, 128], strides = [1, 1]} : vector<8x512xf32> to vector<8x128xf32>
    %163 = arith.negf %162 : vector<8x128xf32>
    %164 = math.exp %163 : vector<8x128xf32>
    %cst_55 = arith.constant 1.000000e+00 : f32
    %165 = vector.broadcast %cst_55 : f32 to vector<8x128xf32>
    %166 = arith.addf %165, %164 : vector<8x128xf32>
    %167 = arith.divf %165, %166 : vector<8x128xf32>
    %168 = vector.extract_strided_slice %155 {offsets = [0, 256], sizes = [8, 128], strides = [1, 1]} : vector<8x512xf32> to vector<8x128xf32>
    %169 = math.tanh %168 : vector<8x128xf32>
    %170 = vector.extract_strided_slice %155 {offsets = [0, 384], sizes = [8, 128], strides = [1, 1]} : vector<8x512xf32> to vector<8x128xf32>
    %171 = arith.negf %170 : vector<8x128xf32>
    %172 = math.exp %171 : vector<8x128xf32>
    %cst_56 = arith.constant 1.000000e+00 : f32
    %173 = vector.broadcast %cst_56 : f32 to vector<8x128xf32>
    %174 = arith.addf %173, %172 : vector<8x128xf32>
    %175 = arith.divf %173, %174 : vector<8x128xf32>
    %176 = arith.mulf %167, %144 : vector<8x128xf32>
    %177 = arith.mulf %161, %169 : vector<8x128xf32>
    %178 = arith.addf %176, %177 : vector<8x128xf32>
    %179 = math.tanh %178 : vector<8x128xf32>
    %180 = arith.mulf %175, %179 : vector<8x128xf32>
    %181 = arith.index_cast %150 : i32 to index
    %c0_57 = arith.constant 0 : index
    %182 = vector.load %arg14[%181, %c0_57] : memref<64x128xf32, #tpu.memory_space<vmem>>, vector<8x128xf32>
    tpu.vector_store %arg14[%181, %c0_57], %180 {strides = array<i32>} : memref<64x128xf32, #tpu.memory_space<vmem>>, vector<8x128xf32>,
    %c5_i32 = arith.constant 5 : i32
    %c8_i32_58 = arith.constant 8 : i32
    %183 = arith.muli %c5_i32, %c8_i32_58 : i32
    %184 = tpu.assume_multiple %183, 8 : i32
    %185 = arith.index_cast %184 : i32 to index
    %c0_59 = arith.constant 0 : index
    %186 = vector.load %arg13[%185, %c0_59] : memref<64x512xf32, #tpu.memory_space<vmem>>, vector<8x512xf32>
    %c0_60 = arith.constant 0 : index
    %c0_61 = arith.constant 0 : index
    %187 = vector.load %arg7[%c0_60, %c0_61] : memref<128x512xf32, #tpu.memory_space<vmem>>, vector<128x512xf32>
    %cst_62 = arith.constant dense<0.000000e+00> : vector<8x512xf32>
    %188 = tpu.matmul %180, %187, %cst_62 {dimension_numbers = #tpu.dot_dimension_numbers<[1], [0], [0], [1], [0, 0, 1, 1], [], []>} : vector<8x128xf32>, vector<128x512xf32>, vector<8x512xf32> -> vector<8x512xf32>
    %189 = arith.addf %186, %188 : vector<8x512xf32>
    %190 = vector.extract_strided_slice %189 {offsets = [0, 0], sizes = [8, 128], strides = [1, 1]} : vector<8x512xf32> to vector<8x128xf32>
    %191 = arith.negf %190 : vector<8x128xf32>
    %192 = math.exp %191 : vector<8x128xf32>
    %cst_63 = arith.constant 1.000000e+00 : f32
    %193 = vector.broadcast %cst_63 : f32 to vector<8x128xf32>
    %194 = arith.addf %193, %192 : vector<8x128xf32>
    %195 = arith.divf %193, %194 : vector<8x128xf32>
    %196 = vector.extract_strided_slice %189 {offsets = [0, 128], sizes = [8, 128], strides = [1, 1]} : vector<8x512xf32> to vector<8x128xf32>
    %197 = arith.negf %196 : vector<8x128xf32>
    %198 = math.exp %197 : vector<8x128xf32>
    %cst_64 = arith.constant 1.000000e+00 : f32
    %199 = vector.broadcast %cst_64 : f32 to vector<8x128xf32>
    %200 = arith.addf %199, %198 : vector<8x128xf32>
    %201 = arith.divf %199, %200 : vector<8x128xf32>
    %202 = vector.extract_strided_slice %189 {offsets = [0, 256], sizes = [8, 128], strides = [1, 1]} : vector<8x512xf32> to vector<8x128xf32>
    %203 = math.tanh %202 : vector<8x128xf32>
    %204 = vector.extract_strided_slice %189 {offsets = [0, 384], sizes = [8, 128], strides = [1, 1]} : vector<8x512xf32> to vector<8x128xf32>
    %205 = arith.negf %204 : vector<8x128xf32>
    %206 = math.exp %205 : vector<8x128xf32>
    %cst_65 = arith.constant 1.000000e+00 : f32
    %207 = vector.broadcast %cst_65 : f32 to vector<8x128xf32>
    %208 = arith.addf %207, %206 : vector<8x128xf32>
    %209 = arith.divf %207, %208 : vector<8x128xf32>
    %210 = arith.mulf %201, %178 : vector<8x128xf32>
    %211 = arith.mulf %195, %203 : vector<8x128xf32>
    %212 = arith.addf %210, %211 : vector<8x128xf32>
    %213 = math.tanh %212 : vector<8x128xf32>
    %214 = arith.mulf %209, %213 : vector<8x128xf32>
    %215 = arith.index_cast %184 : i32 to index
    %c0_66 = arith.constant 0 : index
    %216 = vector.load %arg14[%215, %c0_66] : memref<64x128xf32, #tpu.memory_space<vmem>>, vector<8x128xf32>
    tpu.vector_store %arg14[%215, %c0_66], %214 {strides = array<i32>} : memref<64x128xf32, #tpu.memory_space<vmem>>, vector<8x128xf32>,
    %c6_i32 = arith.constant 6 : i32
    %c8_i32_67 = arith.constant 8 : i32
    %217 = arith.muli %c6_i32, %c8_i32_67 : i32
    %218 = tpu.assume_multiple %217, 8 : i32
    %219 = arith.index_cast %218 : i32 to index
    %c0_68 = arith.constant 0 : index
    %220 = vector.load %arg13[%219, %c0_68] : memref<64x512xf32, #tpu.memory_space<vmem>>, vector<8x512xf32>
    %c0_69 = arith.constant 0 : index
    %c0_70 = arith.constant 0 : index
    %221 = vector.load %arg7[%c0_69, %c0_70] : memref<128x512xf32, #tpu.memory_space<vmem>>, vector<128x512xf32>
    %cst_71 = arith.constant dense<0.000000e+00> : vector<8x512xf32>
    %222 = tpu.matmul %214, %221, %cst_71 {dimension_numbers = #tpu.dot_dimension_numbers<[1], [0], [0], [1], [0, 0, 1, 1], [], []>} : vector<8x128xf32>, vector<128x512xf32>, vector<8x512xf32> -> vector<8x512xf32>
    %223 = arith.addf %220, %222 : vector<8x512xf32>
    %224 = vector.extract_strided_slice %223 {offsets = [0, 0], sizes = [8, 128], strides = [1, 1]} : vector<8x512xf32> to vector<8x128xf32>
    %225 = arith.negf %224 : vector<8x128xf32>
    %226 = math.exp %225 : vector<8x128xf32>
    %cst_72 = arith.constant 1.000000e+00 : f32
    %227 = vector.broadcast %cst_72 : f32 to vector<8x128xf32>
    %228 = arith.addf %227, %226 : vector<8x128xf32>
    %229 = arith.divf %227, %228 : vector<8x128xf32>
    %230 = vector.extract_strided_slice %223 {offsets = [0, 128], sizes = [8, 128], strides = [1, 1]} : vector<8x512xf32> to vector<8x128xf32>
    %231 = arith.negf %230 : vector<8x128xf32>
    %232 = math.exp %231 : vector<8x128xf32>
    %cst_73 = arith.constant 1.000000e+00 : f32
    %233 = vector.broadcast %cst_73 : f32 to vector<8x128xf32>
    %234 = arith.addf %233, %232 : vector<8x128xf32>
    %235 = arith.divf %233, %234 : vector<8x128xf32>
    %236 = vector.extract_strided_slice %223 {offsets = [0, 256], sizes = [8, 128], strides = [1, 1]} : vector<8x512xf32> to vector<8x128xf32>
    %237 = math.tanh %236 : vector<8x128xf32>
    %238 = vector.extract_strided_slice %223 {offsets = [0, 384], sizes = [8, 128], strides = [1, 1]} : vector<8x512xf32> to vector<8x128xf32>
    %239 = arith.negf %238 : vector<8x128xf32>
    %240 = math.exp %239 : vector<8x128xf32>
    %cst_74 = arith.constant 1.000000e+00 : f32
    %241 = vector.broadcast %cst_74 : f32 to vector<8x128xf32>
    %242 = arith.addf %241, %240 : vector<8x128xf32>
    %243 = arith.divf %241, %242 : vector<8x128xf32>
    %244 = arith.mulf %235, %212 : vector<8x128xf32>
    %245 = arith.mulf %229, %237 : vector<8x128xf32>
    %246 = arith.addf %244, %245 : vector<8x128xf32>
    %247 = math.tanh %246 : vector<8x128xf32>
    %248 = arith.mulf %243, %247 : vector<8x128xf32>
    %249 = arith.index_cast %218 : i32 to index
    %c0_75 = arith.constant 0 : index
    %250 = vector.load %arg14[%249, %c0_75] : memref<64x128xf32, #tpu.memory_space<vmem>>, vector<8x128xf32>
    tpu.vector_store %arg14[%249, %c0_75], %248 {strides = array<i32>} : memref<64x128xf32, #tpu.memory_space<vmem>>, vector<8x128xf32>,
    %c7_i32 = arith.constant 7 : i32
    %c8_i32_76 = arith.constant 8 : i32
    %251 = arith.muli %c7_i32, %c8_i32_76 : i32
    %252 = tpu.assume_multiple %251, 8 : i32
    %253 = arith.index_cast %252 : i32 to index
    %c0_77 = arith.constant 0 : index
    %254 = vector.load %arg13[%253, %c0_77] : memref<64x512xf32, #tpu.memory_space<vmem>>, vector<8x512xf32>
    %c0_78 = arith.constant 0 : index
    %c0_79 = arith.constant 0 : index
    %255 = vector.load %arg7[%c0_78, %c0_79] : memref<128x512xf32, #tpu.memory_space<vmem>>, vector<128x512xf32>
    %cst_80 = arith.constant dense<0.000000e+00> : vector<8x512xf32>
    %256 = tpu.matmul %248, %255, %cst_80 {dimension_numbers = #tpu.dot_dimension_numbers<[1], [0], [0], [1], [0, 0, 1, 1], [], []>} : vector<8x128xf32>, vector<128x512xf32>, vector<8x512xf32> -> vector<8x512xf32>
    %257 = arith.addf %254, %256 : vector<8x512xf32>
    %258 = vector.extract_strided_slice %257 {offsets = [0, 0], sizes = [8, 128], strides = [1, 1]} : vector<8x512xf32> to vector<8x128xf32>
    %259 = arith.negf %258 : vector<8x128xf32>
    %260 = math.exp %259 : vector<8x128xf32>
    %cst_81 = arith.constant 1.000000e+00 : f32
    %261 = vector.broadcast %cst_81 : f32 to vector<8x128xf32>
    %262 = arith.addf %261, %260 : vector<8x128xf32>
    %263 = arith.divf %261, %262 : vector<8x128xf32>
    %264 = vector.extract_strided_slice %257 {offsets = [0, 128], sizes = [8, 128], strides = [1, 1]} : vector<8x512xf32> to vector<8x128xf32>
    %265 = arith.negf %264 : vector<8x128xf32>
    %266 = math.exp %265 : vector<8x128xf32>
    %cst_82 = arith.constant 1.000000e+00 : f32
    %267 = vector.broadcast %cst_82 : f32 to vector<8x128xf32>
    %268 = arith.addf %267, %266 : vector<8x128xf32>
    %269 = arith.divf %267, %268 : vector<8x128xf32>
    %270 = vector.extract_strided_slice %257 {offsets = [0, 256], sizes = [8, 128], strides = [1, 1]} : vector<8x512xf32> to vector<8x128xf32>
    %271 = math.tanh %270 : vector<8x128xf32>
    %272 = vector.extract_strided_slice %257 {offsets = [0, 384], sizes = [8, 128], strides = [1, 1]} : vector<8x512xf32> to vector<8x128xf32>
    %273 = arith.negf %272 : vector<8x128xf32>
    %274 = math.exp %273 : vector<8x128xf32>
    %cst_83 = arith.constant 1.000000e+00 : f32
    %275 = vector.broadcast %cst_83 : f32 to vector<8x128xf32>
    %276 = arith.addf %275, %274 : vector<8x128xf32>
    %277 = arith.divf %275, %276 : vector<8x128xf32>
    %278 = arith.mulf %269, %246 : vector<8x128xf32>
    %279 = arith.mulf %263, %271 : vector<8x128xf32>
    %280 = arith.addf %278, %279 : vector<8x128xf32>
    %281 = math.tanh %280 : vector<8x128xf32>
    %282 = arith.mulf %277, %281 : vector<8x128xf32>
    %283 = arith.index_cast %252 : i32 to index
    %c0_84 = arith.constant 0 : index
    %284 = vector.load %arg14[%283, %c0_84] : memref<64x128xf32, #tpu.memory_space<vmem>>, vector<8x128xf32>
    tpu.vector_store %arg14[%283, %c0_84], %282 {strides = array<i32>} : memref<64x128xf32, #tpu.memory_space<vmem>>, vector<8x128xf32>,
    %c8_i32_85 = arith.constant 8 : i32
    %c0_86 = arith.constant 0 : index
    %c0_87 = arith.constant 0 : index
    %285 = vector.load %arg11[%c0_86, %c0_87] : memref<8x128xf32, #tpu.memory_space<vmem>>, vector<8x128xf32>
    tpu.vector_store %arg11[%c0_86, %c0_87], %282 {strides = array<i32>} : memref<8x128xf32, #tpu.memory_space<vmem>>, vector<8x128xf32>,
    %c0_88 = arith.constant 0 : index
    %c0_89 = arith.constant 0 : index
    %286 = vector.load %arg12[%c0_88, %c0_89] : memref<8x128xf32, #tpu.memory_space<vmem>>, vector<8x128xf32>
    tpu.vector_store %arg12[%c0_88, %c0_89], %280 {strides = array<i32>} : memref<8x128xf32, #tpu.memory_space<vmem>>, vector<8x128xf32>,
    %c0_90 = arith.constant 0 : index
    %c0_91 = arith.constant 0 : index
    %287 = vector.load %arg14[%c0_90, %c0_91] : memref<64x128xf32, #tpu.memory_space<vmem>>, vector<64x128xf32>
    %c0_92 = arith.constant 0 : index
    %c0_93 = arith.constant 0 : index
    %288 = vector.load %arg8[%c0_92, %c0_93] : memref<128x128xf32, #tpu.memory_space<vmem>>, vector<128x128xf32>
    %cst_94 = arith.constant dense<0.000000e+00> : vector<64x128xf32>
    %289 = tpu.matmul %287, %288, %cst_94 {dimension_numbers = #tpu.dot_dimension_numbers<[1], [0], [0], [1], [0, 0, 1, 1], [], []>} : vector<64x128xf32>, vector<128x128xf32>, vector<64x128xf32> -> vector<64x128xf32>
    %c0_95 = arith.constant 0 : index
    %c0_96 = arith.constant 0 : index
    %290 = vector.load %arg9[%c0_95, %c0_96] : memref<1x128xf32, #tpu.memory_space<vmem>>, vector<1x128xf32>
    %291 = vector.broadcast %290 : vector<1x128xf32> to vector<64x128xf32>
    %292 = arith.addf %289, %291 : vector<64x128xf32>
    %293 = vector.shape_cast %292 : vector<64x128xf32> to vector<8x8x128xf32>
    %c0_97 = arith.constant 0 : index
    %c0_98 = arith.constant 0 : index
    %c0_99 = arith.constant 0 : index
    %294 = vector.load %arg10[%c0_97, %c0_98, %c0_99] : memref<8x8x128xf32, #tpu.memory_space<vmem>>, vector<8x8x128xf32>
    tpu.vector_store %arg10[%c0_97, %c0_98, %c0_99], %293 {strides = array<i32>} : memref<8x8x128xf32, #tpu.memory_space<vmem>>, vector<8x8x128xf32>,
    return
  }
  func.func @transform_0(%arg0: i32, %arg1: i32) -> (i32, i32) {
    %c0_i32 = arith.constant 0 : i32
    %c0_i32_0 = arith.constant 0 : i32
    return %arg0, %c0_i32 : i32, i32
  }
  func.func @transform_1(%arg0: i32, %arg1: i32) -> (i32, i32) {
    %c0_i32 = arith.constant 0 : i32
    %c0_i32_0 = arith.constant 0 : i32
    %c0_i32_1 = arith.constant 0 : i32
    return %c0_i32, %c0_i32_0 : i32, i32
  }
  func.func @transform_2(%arg0: i32, %arg1: i32) -> (i32, i32, i32) {
    %c0_i32 = arith.constant 0 : i32
    %c0_i32_0 = arith.constant 0 : i32
    return %arg1, %arg0, %c0_i32 : i32, i32, i32
  }
  func.func @transform_3(%arg0: i32, %arg1: i32) -> (i32, i32) {
    %c0_i32 = arith.constant 0 : i32
    %c0_i32_0 = arith.constant 0 : i32
    %c0_i32_1 = arith.constant 0 : i32
    return %c0_i32, %c0_i32_0 : i32, i32
  }
  func.func @transform_4(%arg0: i32, %arg1: i32) -> (i32, i32) {
    %c0_i32 = arith.constant 0 : i32
    %c0_i32_0 = arith.constant 0 : i32
    %c0_i32_1 = arith.constant 0 : i32
    return %c0_i32, %c0_i32_0 : i32, i32
  }
  func.func @transform_5(%arg0: i32, %arg1: i32) -> (i32, i32) {
    %c0_i32 = arith.constant 0 : i32
    %c0_i32_0 = arith.constant 0 : i32
    %c0_i32_1 = arith.constant 0 : i32
    return %c0_i32, %c0_i32_0 : i32, i32
  }
  func.func @transform_6(%arg0: i32, %arg1: i32) -> (i32, i32) {
    %c0_i32 = arith.constant 0 : i32
    %c0_i32_0 = arith.constant 0 : i32
    %c0_i32_1 = arith.constant 0 : i32
    return %c0_i32, %c0_i32_0 : i32, i32
  }
  func.func @transform_7(%arg0: i32, %arg1: i32) -> (i32, i32) {
    %c0_i32 = arith.constant 0 : i32
    %c0_i32_0 = arith.constant 0 : i32
    %c0_i32_1 = arith.constant 0 : i32
    return %c0_i32, %c0_i32_0 : i32, i32
  }
  func.func @transform_8(%arg0: i32, %arg1: i32) -> (i32, i32, i32) {
    %c0_i32 = arith.constant 0 : i32
    %c0_i32_0 = arith.constant 0 : i32
    return %arg1, %arg0, %c0_i32 : i32, i32, i32
  }
  func.func @transform_9(%arg0: i32, %arg1: i32) -> (i32, i32) {
    %c0_i32 = arith.constant 0 : i32
    %c0_i32_0 = arith.constant 0 : i32
    return %arg0, %c0_i32 : i32, i32
  }
  func.func @transform_10(%arg0: i32, %arg1: i32) -> (i32, i32) {
    %c0_i32 = arith.constant 0 : i32
    %c0_i32_0 = arith.constant 0 : i32
    return %arg0, %c0_i32 : i32, i32
  }
}

</mosaic_0001>

<bundles_post_ra>
// kernel: lstm_model_forward.1
= control target key start
LH: loop header
LB: loop body
LE: loop exit
PB: predicated region body
PF: predicated region fallthrough
CT: control target
= control target key end

     0   :  { %v3482_v0 = vmov 0.0|0.0   ;;  %vm3483_vm0 = vmmov 0   ;;  %v4842_v4 = vmov 0.0   ;;  %vm161_vm1 = vcmask 64512   ;;  %s4831_s1 = inlined_call_operand.vmem [shape: f32[128,128], index: 1, kind: input, shape index: {}]   ;;  %s4832_s3 = inlined_call_operand.vmem [shape: f32[8,512], index: 3, kind: input, shape index: {}]   ;;  %s4833_s5 = inlined_call_operand.vmem [shape: f32[128,512], index: 5, kind: input, shape index: {}]   ;;  %s4834_s0 = inlined_call_operand.vmem [shape: f32[8,128], index: 0, kind: input, shape index: {}]   ;;  %s4835_s2 = inlined_call_operand.vmem [shape: f32[8,8,8], index: 2, kind: input, shape index: {}]   ;;  %s4836_s4 = inlined_call_operand.vmem [shape: f32[1,512], index: 4, kind: input, shape index: {}]   ;;  %s4837_s6 = inlined_call_operand.vmem [shape: f32[128,128], index: 6, kind: input, shape index: {}]   ;;  %s4838_s7 = inlined_call_operand.vmem [shape: f32[1,128], index: 7, kind: input, shape index: {}]   ;;  %s4839_s8 = inlined_call_operand.vmem [shape: f32[8,8,128], index: 8, kind: output, shape index: {0}]   ;;  %s4840_s10 = inlined_call_operand.vmem [shape: f32[8,128], index: 10, kind: output, shape index: {2}]   ;;  %s4841_s9 = inlined_call_operand.vmem [shape: f32[8,128], index: 9, kind: output, shape index: {1}]  }
   0x1   :  { %2715 = vmatprep.subr.bf16.mxu0 %v3482_v0  ;;  %v37_v1 = vld [vmem:[%s4831_s1] sm:$0xff]  ;;  %v38_v2 = vld [vmem:[%s4831_s1 + $0x8] sm:$0xff]  ;;  %v39_v3 = vld [vmem:[%s4831_s1 + $0x10] sm:$0xff]  ;;  %2668 = vmatprep.mubr.msk.f32.mxu0 %vm3483_vm0, %v4842_v4 }
   0x2   :  { %v2716_v5 = vpack.c.bf16 %v38_v2, %v37_v1  ;;  %v40_v6 = vld [vmem:[%s4831_s1 + $0x18] sm:$0xff]  ;;  %363 = vmatprep.mubr.f32.mxu1 %v4842_v4  ;;  %v41_v8 = vld [vmem:[%s4831_s1 + $0x20] sm:$0xff]  ;;  %v42_v9 = vld [vmem:[%s4831_s1 + $0x28] sm:$0xff] }
   0x3   :  { %v2719_v7 = vpack.c.bf16 %v40_v6, %v39_v3  ;;  %v2722_v10 = vpack.c.bf16 %v42_v9, %v41_v8  ;;  %v43_v11 = vld [vmem:[%s4831_s1 + $0x30] sm:$0xff]  ;;  %v44_v12 = vld [vmem:[%s4831_s1 + $0x38] sm:$0xff]  ;;  %v45_v14 = vld [vmem:[%s4831_s1 + $0x40] sm:$0xff] }
   0x4   :  { %2717 = vmatpush3.bf16.msra.mxu0 %v2716_v5  ;;  %v2725_v13 = vpack.c.bf16 %v44_v12, %v43_v11  ;;  %v46_v15 = vld [vmem:[%s4831_s1 + $0x48] sm:$0xff]  ;;  %v47_v17 = vld [vmem:[%s4831_s1 + $0x50] sm:$0xff]  ;;  %v48_v18 = vld [vmem:[%s4831_s1 + $0x58] sm:$0xff] }
   0x5   :  { %2718 = vmatprep.subr.bf16.mxu0 %v3482_v0  ;;  %v2728_v16 = vpack.c.bf16 %v46_v15, %v45_v14  ;;  %v2731_v19 = vpack.c.bf16 %v48_v18, %v47_v17  ;;  %v49_v20 = vld [vmem:[%s4831_s1 + $0x60] sm:$0xff]  ;;  %v50_v21 = vld [vmem:[%s4831_s1 + $0x68] sm:$0xff]  ;;  %v51_v23 = vld [vmem:[%s4831_s1 + $0x70] sm:$0xff] }
   0x6   :  { %v2734_v22 = vpack.c.bf16 %v50_v21, %v49_v20  ;;  %v52_v24 = vld [vmem:[%s4831_s1 + $0x78] sm:$0xff]  ;;  %v136_v26 = vld [vmem:[%s4832_s3 + $0x8] sm:$0xff]  ;;  %v36_v29 = vld [vmem:[%s4834_s0] sm:$0xff] }
   0x7   :  { %v2737_v25 = vpack.c.bf16 %v52_v24, %v51_v23  ;;  %v454_v27 = vld [vmem:[%s4833_s5 + $0x8] sm:$0xff]  ;;  %v135_v30 = vld [vmem:[%s4832_s3] sm:$0xff]  ;;  %v3675_v50 = vld [vmem:[%s4835_s2 + $0x10] sm:$0xff] }
   0x8   :  { %2720 = vmatpush3.bf16.msra.mxu0 %v2719_v7  ;;  %v458_v28 = vld [vmem:[%s4833_s5 + $0x28] sm:$0xff]  ;;  %v453_v32 = vld [vmem:[%s4833_s5] sm:$0xff]  ;;  %v3689_v53 = vld [vmem:[%s4835_s2 + $0x18] sm:$0xff] }
   0x9   :  { %2721 = vmatprep.subr.bf16.mxu0 %v3482_v0  ;;  %v3605_v31 = vpack.c.bf16 %v458_v28, %v454_v27  ;;  %v457_v33 = vld [vmem:[%s4833_s5 + $0x20] sm:$0xff]  ;;  %v462_v34 = vld [vmem:[%s4833_s5 + $0x48] sm:$0xff]  ;;  %v3799_v20 = vld [vmem:[%s4835_s2 + $0x38] sm:$0xff] }
   0xa   :  { %v466_v35 = vld [vmem:[%s4833_s5 + $0x68] sm:$0xff]  ;;  %v3623_v36 = vld [vmem:[%s4835_s2] sm:$0xff]  ;;  %v3625_v37 = vpack.c.bf16 %v457_v33, %v453_v32  ;;  %v460_v23 = vld [vmem:[%s4833_s5 + $0x38] sm:$0xff] }
   0xb   :  { %v3628_v38 = vpack.c.bf16 %v466_v35, %v462_v34  ;;  %v461_v39 = vld [vmem:[%s4833_s5 + $0x40] sm:$0xff]  ;;  %v470_v41 = vld [vmem:[%s4833_s5 + $0x88] sm:$0xff]  ;;  %v464_v27 = vld [vmem:[%s4833_s5 + $0x58] sm:$0xff] }
   0xc   :  { %2723 = vmatpush3.bf16.msra.mxu0 %v2722_v10  ;;  %v465_v40 = vld [vmem:[%s4833_s5 + $0x60] sm:$0xff]  ;;  %v474_v42 = vld [vmem:[%s4833_s5 + $0xa8] sm:$0xff]  ;;  %v468_v28 = vld [vmem:[%s4833_s5 + $0x78] sm:$0xff] }
   0xd   :  { %2724 = vmatprep.subr.bf16.mxu0 %v3482_v0  ;;  %v3649_v43 = vld [vmem:[%s4835_s2 + $0x8] sm:$0xff]  ;;  %v3651_v44 = vpack.c.bf16 %v465_v40, %v461_v39  ;;  %v3654_v45 = vpack.c.bf16 %v474_v42, %v470_v41  ;;  %v469_v46 = vld [vmem:[%s4833_s5 + $0x80] sm:$0xff]  ;;  %v3837_v33 = vpack.c.bf16 %v468_v28, %v464_v27  ;;  %v463_v34 = vld [vmem:[%s4833_s5 + $0x50] sm:$0xff] }
   0xe   :  { %v473_v47 = vld [vmem:[%s4833_s5 + $0xa0] sm:$0xff]  ;;  %v478_v48 = vld [vmem:[%s4833_s5 + $0xc8] sm:$0xff]  ;;  %v467_v35 = vld [vmem:[%s4833_s5 + $0x70] sm:$0xff] }
   0xf   :  { %v482_v49 = vld [vmem:[%s4833_s5 + $0xe8] sm:$0xff]  ;;  %v3677_v51 = vpack.c.bf16 %v473_v47, %v469_v46  ;;  %v477_v54 = vld [vmem:[%s4833_s5 + $0xc0] sm:$0xff]  ;;  %v472_v39 = vld [vmem:[%s4833_s5 + $0x98] sm:$0xff]  ;;  %v3857_v41 = vpack.c.bf16 %v467_v35, %v463_v34 }
  0x10   :  { %2726 = vmatpush3.bf16.msra.mxu0 %v2725_v13  ;;  %v3680_v52 = vpack.c.bf16 %v482_v49, %v478_v48  ;;  %v481_v55 = vld [vmem:[%s4833_s5 + $0xe0] sm:$0xff]  ;;  %v486_v57 = vld [vmem:[%s4833_s5 + $0x108] sm:$0xff]  ;;  %v3773_v13 = vld [vmem:[%s4835_s2 + $0x30] sm:$0xff] }
  0x11   :  { %2727 = vmatprep.subr.bf16.mxu0 %v3482_v0  ;;  %v3701_v56 = vpack.c.bf16 %v481_v55, %v477_v54  ;;  %v490_v58 = vld [vmem:[%s4833_s5 + $0x128] sm:$0xff]  ;;  %v485_v60 = vld [vmem:[%s4833_s5 + $0x100] sm:$0xff]  ;;  %v476_v40 = vld [vmem:[%s4833_s5 + $0xb8] sm:$0xff] }
  0x12   :  { %v3710_v59 = vpack.c.bf16 %v490_v58, %v486_v57  ;;  %v489_v61 = vld [vmem:[%s4833_s5 + $0x120] sm:$0xff]  ;;  %v498_v1 = vld [vmem:[%s4833_s5 + $0x168] sm:$0xff]  ;;  %v3859_v42 = vpack.c.bf16 %v476_v40, %v472_v39  ;;  %v475_v46 = vld [vmem:[%s4833_s5 + $0xb0] sm:$0xff] }
  0x13   :  { %v3721_v62 = vld [vmem:[%s4835_s2 + $0x20] sm:$0xff]  ;;  %v3723_v63 = vpack.c.bf16 %v489_v61, %v485_v60  ;;  %v3747_v6 = vld [vmem:[%s4835_s2 + $0x28] sm:$0xff]  ;;  %v480_v47 = vld [vmem:[%s4833_s5 + $0xd8] sm:$0xff] }
  0x14   :  { %2729 = vmatpush3.bf16.msra.mxu0 %v2728_v16  ;;  %v493_v3 = vld [vmem:[%s4833_s5 + $0x140] sm:$0xff]  ;;  %v502_v8 = vld [vmem:[%s4833_s5 + $0x188] sm:$0xff]  ;;  %v484_v48 = vld [vmem:[%s4833_s5 + $0xf8] sm:$0xff] }
  0x15   :  { %2730 = vmatprep.subr.bf16.mxu0 %v3482_v0  ;;  %v497_v5 = vld [vmem:[%s4833_s5 + $0x160] sm:$0xff]  ;;  %v506_v9 = vld [vmem:[%s4833_s5 + $0x1a8] sm:$0xff]  ;;  %v3880_v54 = vpack.c.bf16 %v484_v48, %v480_v47  ;;  %v483_v55 = vld [vmem:[%s4833_s5 + $0xf0] sm:$0xff] }
  0x16   :  { %v3749_v7 = vpack.c.bf16 %v497_v5, %v493_v3  ;;  %v3762_v10 = vpack.c.bf16 %v506_v9, %v502_v8  ;;  %v501_v11 = vld [vmem:[%s4833_s5 + $0x180] sm:$0xff]  ;;  %v510_v15 = vld [vmem:[%s4833_s5 + $0x1c8] sm:$0xff]  ;;  %v488_v57 = vld [vmem:[%s4833_s5 + $0x118] sm:$0xff] }
  0x17   :  { %v505_v12 = vld [vmem:[%s4833_s5 + $0x1a0] sm:$0xff]  ;;  %v514_v16 = vld [vmem:[%s4833_s5 + $0x1e8] sm:$0xff]  ;;  %v492_v58 = vld [vmem:[%s4833_s5 + $0x138] sm:$0xff] }
  0x18   :  { %2732 = vmatpush3.bf16.msra.mxu0 %v2731_v19  ;;  %v3775_v14 = vpack.c.bf16 %v505_v12, %v501_v11  ;;  %v3788_v17 = vpack.c.bf16 %v514_v16, %v510_v15  ;;  %v509_v18 = vld [vmem:[%s4833_s5 + $0x1c0] sm:$0xff]  ;;  %v3901_v61 = vpack.c.bf16 %v492_v58, %v488_v57  ;;  %v496_v5 = vld [vmem:[%s4833_s5 + $0x158] sm:$0xff]  ;;  %v495_v9 = vld [vmem:[%s4833_s5 + $0x150] sm:$0xff] }
  0x19   :  { %2733 = vmatprep.subr.bf16.mxu0 %v3482_v0  ;;  %v513_v19 = vld [vmem:[%s4833_s5 + $0x1e0] sm:$0xff]  ;;  %v499_v11 = vld [vmem:[%s4833_s5 + $0x170] sm:$0xff]  ;;  %v504_v12 = vld [vmem:[%s4833_s5 + $0x198] sm:$0xff] }
  0x1a   :  { %v3801_v21 = vpack.c.bf16 %v513_v19, %v509_v18  ;;  %v3962_v15 = vpack.c.bf16 %v499_v11, %v495_v9  ;;  %v503_v18 = vld [vmem:[%s4833_s5 + $0x190] sm:$0xff]  ;;  %v139_v58 = vld [vmem:[%s4836_s4] sm:$0xf] }
  0x1b   :  { %v507_v19 = vld [vmem:[%s4833_s5 + $0x1b0] sm:$0xff] }
  0x1c   :  { %2735 = vmatpush3.bf16.msra.mxu0 %v2734_v22  ;;  %v456_v22 = vld [vmem:[%s4833_s5 + $0x18] sm:$0xff]  ;;  %v515_v27 = vld [vmem:[%s4833_s5 + $0x1f0] sm:$0xff] }
  0x1d   :  { %2736 = vmatprep.subr.bf16.mxu0 %v3482_v0  ;;  %v494_v0 = vld [vmem:[%s4833_s5 + $0x148] sm:$0xff]  ;;  %v3814_v24 = vpack.c.bf16 %v460_v23, %v456_v22  ;;  %v516_v22 = vld [vmem:[%s4833_s5 + $0x1f8] sm:$0xff]  ;;  %v3980_v23 = vpack.c.bf16 %v507_v19, %v503_v18 }
  0x1e   :  { %v3736_v2 = vpack.c.bf16 %v498_v1, %v494_v0  ;;  %v491_v0 = vld [vmem:[%s4833_s5 + $0x130] sm:$0xff] }
  0x20   :  { %2738 = vmatpush3.bf16.msra.mxu0 %v2737_v25  ;;  %v455_v25 = vld [vmem:[%s4833_s5 + $0x10] sm:$0xff] }
  0x21   :  { %186 = vmatprep.subr.mxu0 %v136_v26  ;;  %v459_v26 = vld [vmem:[%s4833_s5 + $0x30] sm:$0xff] }
  0x22   :  { %v3835_v32 = vpack.c.bf16 %v459_v26, %v455_v25  ;;  %v511_v26 = vld [vmem:[%s4833_s5 + $0x1d0] sm:$0xff] }
  0x23   :  { %2669 = vmatmul.mubr.f32.vlgmr.msra.gmra.mrb[0].mxu0 %v36_v29  ;;  %v138_v29 = vld [vmem:[%s4832_s3 + $0x18] sm:$0xff]  ;;  %v3992_v28 = vpack.c.bf16 %v515_v27, %v511_v26 }
  0x24   :  { %187 = vmatpush1.msra.mxu0 %v135_v30  ;;  %250 = vmatprep.mubr.f32.mxu0 %v4842_v4  ;;  %v137_v30 = vld [vmem:[%s4832_s3 + $0x10] sm:$0xff] }
  0x25   :  { %2740 = vmatprep.subr.bf16.mxu0 %v3605_v31  ;;  %299 = vmatprep.subr.mxu1 %v138_v29 }
  0x26   :  { %300 = vmatpush1.msra.mxu1 %v137_v30 }
  0x27   :  { %2554 = vmatmul.mubr.msk.f32.vlgmr.msra.gmra.mrb[2].mxu0 %vm161_vm1, %v3623_v36  ;;  %2562 = vmatmul.mubr.msk.f32.vlgmr.msra.gmra.mrb[0].mxu1 %vm161_vm1, %v3623_v36  ;;  %v471_v36 = vld [vmem:[%s4833_s5 + $0x90] sm:$0xff] }
  0x28   :  { %2742 = vmatpush1.bf16.msra.mxu0 %v3625_v37  ;;  %256 = vmatprep.mubr.f32.mxu0 %v4842_v4  ;;  %v3878_v49 = vpack.c.bf16 %v475_v46, %v471_v36 }
  0x29   :  { %2744 = vmatprep.subr.bf16.mxu0 %v3628_v38  ;;  %2964 = vmatprep.subr.bf16.mxu1 %v3814_v24 }
  0x2a   :  { %369 = vmatprep.mubr.f32.mxu1 %v4842_v4  ;;  %2966 = vmatpush1.bf16.msra.mxu1 %v3835_v32 }
  0x2b   :  { %2555 = vmatmul.mubr.msk.f32.gmra.mrb[4].mxu0 %vm161_vm1, %v3649_v43  ;;  %2968 = vmatprep.subr.bf16.mxu1 %v3837_v33 }
  0x2c   :  { %2746 = vmatpush1.bf16.msra.mxu0 %v3651_v44  ;;  %262 = vmatprep.mubr.f32.mxu0 %v4842_v4 }
  0x2d   :  { %2748 = vmatprep.subr.bf16.mxu0 %v3654_v45  ;;  %2563 = vmatmul.mubr.msk.f32.gmra.mrb[2].mxu1 %vm161_vm1, %v3649_v43  ;;  %v479_v43 = vld [vmem:[%s4833_s5 + $0xd0] sm:$0xff] }
  0x2e   :  { %375 = vmatprep.mubr.f32.mxu1 %v4842_v4  ;;  %2970 = vmatpush1.bf16.msra.mxu1 %v3857_v41  ;;  %v3899_v60 = vpack.c.bf16 %v483_v55, %v479_v43  ;;  %v141_v43 = vlaneseq }
  0x2f   :  { %2556 = vmatmul.mubr.msk.f32.gmra.mrb[6].mxu0 %vm161_vm1, %v3675_v50  ;;  %2972 = vmatprep.subr.bf16.mxu1 %v3859_v42 }
  0x30   :  { %2750 = vmatpush1.bf16.msra.mxu0 %v3677_v51  ;;  %268 = vmatprep.mubr.f32.mxu0 %v4842_v4  ;;  %v142_v55 = vshrl.u32 %v141_v43, 7 }
  0x31   :  { %2752 = vmatprep.subr.bf16.mxu0 %v3680_v52  ;;  %2564 = vmatmul.mubr.msk.f32.gmra.mrb[4].mxu1 %vm161_vm1, %v3675_v50  ;;  %v487_v50 = vld [vmem:[%s4833_s5 + $0x110] sm:$0xff] }
  0x32   :  { %2974 = vmatpush1.bf16.msra.mxu1 %v3878_v49  ;;  %381 = vmatprep.mubr.f32.mxu1 %v4842_v4  ;;  %v3914_v1 = vpack.c.bf16 %v491_v0, %v487_v50  ;;  %v147_v57 = vsub.s32 1, %v142_v55  ;;  %v151_v19 = vsub.s32 2, %v142_v55 }
  0x33   :  { %2557 = vmatmul.mubr.msk.f32.gmra.mrb[8].mxu0 %vm161_vm1, %v3689_v53  ;;  %2976 = vmatprep.subr.bf16.mxu1 %v3880_v54 }
  0x34   :  { %274 = vmatprep.mubr.f32.mxu0 %v4842_v4  ;;  %2754 = vmatpush1.bf16.msra.mxu0 %v3701_v56  ;;  %v4034_v50 = vrot.slane %v139_v58, %v147_v57 }
  0x35   :  { %2756 = vmatprep.subr.bf16.mxu0 %v3710_v59  ;;  %2565 = vmatmul.mubr.msk.f32.gmra.mrb[6].mxu1 %vm161_vm1, %v3689_v53 }
  0x36   :  { %2978 = vmatpush1.bf16.msra.mxu1 %v3899_v60  ;;  %387 = vmatprep.mubr.f32.mxu1 %v4842_v4 }
  0x37   :  { %2558 = vmatmul.mubr.msk.f32.gmra.mrb[10].mxu0 %vm161_vm1, %v3721_v62  ;;  %2980 = vmatprep.subr.bf16.mxu1 %v3901_v61 }
  0x38   :  { %2758 = vmatpush1.bf16.msra.mxu0 %v3723_v63  ;;  %280 = vmatprep.mubr.f32.mxu0 %v4842_v4 }
  0x39   :  { %2760 = vmatprep.subr.bf16.mxu0 %v3736_v2  ;;  %2566 = vmatmul.mubr.msk.f32.gmra.mrb[8].mxu1 %vm161_vm1, %v3721_v62 }
  0x3a   :  { %2982 = vmatpush1.bf16.msra.mxu1 %v3914_v1  ;;  %393 = vmatprep.mubr.f32.mxu1 %v4842_v4 }
  0x3b   :  { %2559 = vmatmul.mubr.msk.f32.gmra.mrb[12].mxu0 %vm161_vm1, %v3747_v6 }
  0x3c   :  { %2762 = vmatpush1.bf16.msra.mxu0 %v3749_v7  ;;  %286 = vmatprep.mubr.f32.mxu0 %v4842_v4 }
  0x3d   :  { %2764 = vmatprep.subr.bf16.mxu0 %v3762_v10  ;;  %2567 = vmatmul.mubr.msk.f32.gmra.mrb[10].mxu1 %vm161_vm1, %v3747_v6  ;;  %v500_v6 = vld [vmem:[%s4833_s5 + $0x178] sm:$0xff] }
  0x3e   :  { %399 = vmatprep.mubr.f32.mxu1 %v4842_v4  ;;  %v3947_v8 = vpack.c.bf16 %v500_v6, %v496_v5  ;;  %v143_v5 = vsub.s32 0, %v142_v55 }
  0x3f   :  { %2560 = vmatmul.mubr.msk.f32.gmra.mrb[14].mxu0 %vm161_vm1, %v3773_v13 }
  0x40   :  { %2766 = vmatpush1.bf16.msra.mxu0 %v3775_v14  ;;  %292 = vmatprep.mubr.f32.mxu0 %v4842_v4  ;;  %v4037_v9 = vrot.slane %v139_v58, %v143_v5 }
  0x41   :  { %2768 = vmatprep.subr.bf16.mxu0 %v3788_v17  ;;  %2568 = vmatmul.mubr.msk.f32.gmra.mrb[12].mxu1 %vm161_vm1, %v3773_v13  ;;  %v508_v13 = vld [vmem:[%s4833_s5 + $0x1b8] sm:$0xff] }
  0x42   :  { %405 = vmatprep.mubr.f32.mxu1 %v4842_v4  ;;  %v3965_v16 = vpack.c.bf16 %v508_v13, %v504_v12 }
  0x43   :  { %2561 = vmatmul.mubr.msk.f32.gmra.mrb[16].mxu0 %vm161_vm1, %v3799_v20 }
  0x44   :  { %2770 = vmatpush1.bf16.msra.mxu0 %v3801_v21  ;;  %581 = vmatprep.mubr.f32.mxu0 %v4842_v4 }
  0x45   :  { %2772 = vmatprep.subr.bf16.mxu0 %v3814_v24  ;;  %2569 = vmatmul.mubr.msk.f32.gmra.mrb[14].mxu1 %vm161_vm1, %v3799_v20  ;;  %v512_v20 = vld [vmem:[%s4833_s5 + $0x1d8] sm:$0xff] }
  0x46   :  { %1380 = vmatprep.mubr.f32.mxu1 %v4842_v4  ;;  %v3983_v25 = vpack.c.bf16 %v516_v22, %v512_v20  ;;  %v155_v20 = vsub.s32 3, %v142_v55  ;;  %v4041_v22 = vrot.slane %v139_v58, %v151_v19 }
  0x48   :  { %v4043_v26 = vrot.slane %v139_v58, %v155_v20 }
  0xf6   :  { %v119_v53 = vpop.f32.mrb[0].mxu0 }
  0xf7   :  { %3350 = vtanh.f32 %v119_v53  ;;  %v2670_v62 = vpop.f32.mrb[1].mxu0 }
  0xfa   :  { %v365_v47 = vpop.f32.mrb[0].mxu1 }
  0xfb   :  { %v367_v48 = vpop.f32.mrb[1].mxu1 }
  0xfc   :  { %v368_v5 = vadd.f32 %v367_v48, %v4043_v26 }
 0x101   :  { %v3929_v3 = vpop.eup %3350 }
 0x102   :  { %582 = vmatmul.mubr.f32.vlgmr.msra.gmra.mrb[2].mxu0 %v3929_v3 }
 0x103   :  { %2774 = vmatpush1.bf16.msra.mxu0 %v3835_v32  ;;  %652 = vmatprep.mubr.f32.mxu0 %v4842_v4 }
 0x104   :  { %2776 = vmatprep.subr.bf16.mxu0 %v3837_v33 }
 0x107   :  { %2778 = vmatpush1.bf16.msra.mxu0 %v3857_v41 }
 0x108   :  { %2780 = vmatprep.subr.bf16.mxu0 %v3859_v42 }
 0x10a   :  { %v4015_v29 = vpop.f32.mrb[10].mxu0 }
 0x10b   :  { %2782 = vmatpush1.bf16.msra.mxu0 %v3878_v49  ;;  %v4017_v30 = vpop.f32.mrb[11].mxu0 }
 0x10c   :  { %2784 = vmatprep.subr.bf16.mxu0 %v3880_v54 }
 0x10e   :  { %v4019_v34 = vpop.f32.mrb[12].mxu0 }
 0x10f   :  { %2786 = vmatpush1.bf16.msra.mxu0 %v3899_v60  ;;  %v4021_v35 = vpop.f32.mrb[13].mxu0 }
 0x110   :  { %2788 = vmatprep.subr.bf16.mxu0 %v3901_v61 }
 0x112   :  { %v4023_v39 = vpop.f32.mrb[14].mxu0 }
 0x113   :  { %2790 = vmatpush1.bf16.msra.mxu0 %v3914_v1  ;;  %v4025_v40 = vpop.f32.mrb[15].mxu0 }
 0x114   :  { %2792 = vmatprep.subr.bf16.mxu0 %v3947_v8 }
 0x116   :  { %v4027_v36 = vpop.f32.mrb[16].mxu0 }
 0x117   :  { %2794 = vmatpush1.bf16.msra.mxu0 %v3962_v15  ;;  %v4029_v46 = vpop.f32.mrb[17].mxu0 }
 0x118   :  { %2796 = vmatprep.subr.bf16.mxu0 %v3965_v16 }
 0x11b   :  { %2798 = vmatpush1.bf16.msra.mxu0 %v3980_v23 }
 0x11c   :  { %2800 = vmatprep.subr.bf16.mxu0 %v3983_v25 }
 0x11f   :  { %2802 = vmatpush1.bf16.msra.mxu0 %v3992_v28 }
 0x120   :  { %2804 = vmatprep.subr.bf16.mxu0 %v3605_v31 }
 0x122   :  { %653 = vmatmul.mubr.f32.vlgmr.msra.gmra.mrb[18].mxu0 %v3929_v3 }
 0x123   :  { %2806 = vmatpush1.bf16.msra.mxu0 %v3625_v37  ;;  %823 = vmatprep.mubr.f32.mxu0 %v4842_v4 }
 0x124   :  { %2808 = vmatprep.subr.bf16.mxu0 %v3628_v38 }
 0x127   :  { %2810 = vmatpush1.bf16.msra.mxu0 %v3651_v44 }
 0x128   :  { %2812 = vmatprep.subr.bf16.mxu0 %v3654_v45 }
 0x12b   :  { %2814 = vmatpush1.bf16.msra.mxu0 %v3677_v51 }
 0x12c   :  { %2816 = vmatprep.subr.bf16.mxu0 %v3680_v52 }
 0x12f   :  { %2818 = vmatpush1.bf16.msra.mxu0 %v3701_v56 }
 0x130   :  { %2820 = vmatprep.subr.bf16.mxu0 %v3710_v59 }
 0x133   :  { %2822 = vmatpush1.bf16.msra.mxu0 %v3723_v63 }
 0x134   :  { %2824 = vmatprep.subr.bf16.mxu0 %v3736_v2 }
 0x137   :  { %2826 = vmatpush1.bf16.msra.mxu0 %v3749_v7 }
 0x138   :  { %2828 = vmatprep.subr.bf16.mxu0 %v3762_v10 }
 0x13b   :  { %2830 = vmatpush1.bf16.msra.mxu0 %v3775_v14 }
 0x13c   :  { %2832 = vmatprep.subr.bf16.mxu0 %v3788_v17 }
 0x13f   :  { %2834 = vmatpush1.bf16.msra.mxu0 %v3801_v21 }
 0x140   :  { %2836 = vmatprep.subr.bf16.mxu0 %v3814_v24 }
 0x1d5   :  { %v583_v0 = vpop.f32.mrb[2].mxu0 }
 0x1d6   :  { %v585_v53 = vpop.f32.mrb[3].mxu0  ;;  %v3283_v11 = vadd.f32 %v583_v0, %v4037_v9 }
 0x1d7   :  { %v3284_v62 = vadd.f32 %v585_v53, %v4034_v50  ;;  %v366_v53 = vadd.f32 %v365_v47, %v4041_v22 }
 0x1d8   :  { %v2570_v12 = vmul.f32 -1.442695, %v3283_v11 }
 0x1d9   :  { %v2571_v6 = vmul.f32 -1.442695, %v3284_v62 }
 0x1db   :  { %3352 = vpow2.f32 %v2571_v6 }
 0x1dc   :  { %3354 = vpow2.f32 %v2570_v12 }
 0x1dd   :  { %3356 = vtanh.f32 %v3929_v3 }
 0x1e5   :  { %v3353_v13 = vpop.eup %3352 }
 0x1e6   :  { %v672_v18 = vadd.f32 1.0, %v3353_v13  ;;  %v3355_v27 = vpop.eup %3354 }
 0x1e7   :  { %v3357_v43 = vpop.eup %3356  ;;  %v666_v62 = vadd.f32 1.0, %v3355_v27 }
 0x1e8   :  { %3358 = vrcp.f32 %v672_v18 }
 0x1e9   :  { %3360 = vrcp.f32 %v666_v62 }
 0x1f2   :  { %v3359_v57 = vpop.eup %3358 }
 0x1f3   :  { %v682_v0 = vmul.f32 %v3359_v57, %v3357_v43  ;;  %v3361_v13 = vpop.eup %3360  ;;  %v4844_v43 = vmov 0.0  }
 0x1f5   :  { %v654_v6 = vpop.f32.mrb[18].mxu0 }
 0x1f6   :  { %v661_v11 = vadd.f32 %v654_v6, %v366_v53  ;;  %v656_v12 = vpop.f32.mrb[19].mxu0 }
 0x1f7   :  { %v662_v3 = vadd.f32 %v656_v12, %v368_v5 }
 0x1f8   :  { %3362 = vtanh.f32 %v661_v11 }
 0x1f9   :  { %v2572_v55 = vmul.f32 -1.442695, %v662_v3 }
 0x1fb   :  { %3364 = vpow2.f32 %v2572_v55 }
 0x202   :  { %v3363_v58 = vpop.eup %3362 }
 0x203   :  { %v683_v18 = vmul.f32 %v3363_v58, %v3361_v13 }
 0x205   :  { %v3365_v19 = vpop.eup %3364  ;;  %v4047_v20 = vadd.f32 %v683_v18, %v682_v0  ;;  %v1202_v18 = vld [vmem:[%s4833_s5 + $0xa8] sm:$0xff] }
 0x206   :  { %v679_v4 = vadd.f32 1.0, %v3365_v19 }
 0x207   :  { %3366 = vtanh.f32 %v4047_v20 }
 0x208   :  { %3368 = vrcp.f32 %v679_v4  ;;  %v371_v4 = vpop.f32.mrb[2].mxu1 }
 0x211   :  { %v3367_v47 = vpop.eup %3366 }
 0x212   :  { %v3369_v48 = vpop.eup %3368 }
 0x213   :  { %v4050_v27 = vmul.f32 %v3369_v48, %v3367_v47  ;;  %v1201_v47 = vld [vmem:[%s4833_s5 + $0xa0] sm:$0xff] }
 0x215   :  { %824 = vmatmul.mubr.f32.vlgmr.msra.gmra.mrb[4].mxu0 %v4050_v27 }
 0x216   :  { %2838 = vmatpush1.bf16.msra.mxu0 %v3835_v32  ;;  %894 = vmatprep.mubr.f32.mxu0 %v4844_v43 }
 0x217   :  { %2840 = vmatprep.subr.bf16.mxu0 %v3837_v33 }
 0x21a   :  { %2842 = vmatpush1.bf16.msra.mxu0 %v3857_v41 }
 0x21b   :  { %2844 = vmatprep.subr.bf16.mxu0 %v3859_v42 }
 0x21e   :  { %2846 = vmatpush1.bf16.msra.mxu0 %v3878_v49 }
 0x21f   :  { %2848 = vmatprep.subr.bf16.mxu0 %v3880_v54 }
 0x222   :  { %2850 = vmatpush1.bf16.msra.mxu0 %v3899_v60 }
 0x223   :  { %2852 = vmatprep.subr.bf16.mxu0 %v3901_v61 }
 0x226   :  { %2854 = vmatpush1.bf16.msra.mxu0 %v3914_v1 }
 0x227   :  { %2856 = vmatprep.subr.bf16.mxu0 %v3947_v8 }
 0x22a   :  { %2858 = vmatpush1.bf16.msra.mxu0 %v3962_v15 }
 0x22b   :  { %2860 = vmatprep.subr.bf16.mxu0 %v3965_v16 }
 0x22e   :  { %2862 = vmatpush1.bf16.msra.mxu0 %v3980_v23 }
 0x22f   :  { %2864 = vmatprep.subr.bf16.mxu0 %v3983_v25 }
 0x232   :  { %2866 = vmatpush1.bf16.msra.mxu0 %v3992_v28 }
 0x233   :  { %2868 = vmatprep.subr.bf16.mxu0 %v3605_v31  ;;  %v373_v31 = vpop.f32.mrb[3].mxu1 }
 0x235   :  { %895 = vmatmul.mubr.f32.vlgmr.msra.gmra.mrb[20].mxu0 %v4050_v27 }
 0x236   :  { %2870 = vmatpush1.bf16.msra.mxu0 %v3625_v37  ;;  %1066 = vmatprep.mubr.f32.mxu0 %v4844_v43 }
 0x237   :  { %2872 = vmatprep.subr.bf16.mxu0 %v3628_v38 }
 0x23a   :  { %2874 = vmatpush1.bf16.msra.mxu0 %v3651_v44 }
 0x23b   :  { %2876 = vmatprep.subr.bf16.mxu0 %v3654_v45 }
 0x23e   :  { %2878 = vmatpush1.bf16.msra.mxu0 %v3677_v51 }
 0x23f   :  { %2880 = vmatprep.subr.bf16.mxu0 %v3680_v52 }
 0x242   :  { %2882 = vmatpush1.bf16.msra.mxu0 %v3701_v56 }
 0x243   :  { %2884 = vmatprep.subr.bf16.mxu0 %v3710_v59 }
 0x246   :  { %2886 = vmatpush1.bf16.msra.mxu0 %v3723_v63 }
 0x247   :  { %2888 = vmatprep.subr.bf16.mxu0 %v3736_v2  ;;  %v372_v2 = vadd.f32 %v371_v4, %v4041_v22  ;;  %v1206_v4 = vld [vmem:[%s4833_s5 + $0xc8] sm:$0xff] }
 0x24a   :  { %2890 = vmatpush1.bf16.msra.mxu0 %v3749_v7 }
 0x24b   :  { %2892 = vmatprep.subr.bf16.mxu0 %v3762_v10  ;;  %v374_v10 = vadd.f32 %v373_v31, %v4043_v26  ;;  %v1210_v31 = vld [vmem:[%s4833_s5 + $0xe8] sm:$0xff] }
 0x24e   :  { %2894 = vmatpush1.bf16.msra.mxu0 %v3775_v14 }
 0x24f   :  { %2896 = vmatprep.subr.bf16.mxu0 %v3788_v17 }
 0x252   :  { %2898 = vmatpush1.bf16.msra.mxu0 %v3801_v21 }
 0x253   :  { %2900 = vmatprep.subr.bf16.mxu0 %v3814_v24 }
 0x2e8   :  { %v825_v37 = vpop.f32.mrb[4].mxu0 }
 0x2e9   :  { %v827_v38 = vpop.f32.mrb[5].mxu0  ;;  %v3285_v45 = vadd.f32 %v825_v37, %v4037_v9  ;;  %v4181_v37 = vpack.c.bf16 %v1210_v31, %v1206_v4  ;;  %v1240_v31 = vld [vmem:[%s4833_s5 + $0x1d8] sm:$0xff] }
 0x2ea   :  { %v3286_v44 = vadd.f32 %v827_v38, %v4034_v50  ;;  %v1205_v38 = vld [vmem:[%s4833_s5 + $0xc0] sm:$0xff] }
 0x2eb   :  { %v2573_v52 = vmul.f32 -1.442695, %v3285_v45 }
 0x2ec   :  { %v2574_v51 = vmul.f32 -1.442695, %v3286_v44  ;;  %v1209_v44 = vld [vmem:[%s4833_s5 + $0xe0] sm:$0xff] }
 0x2ed   :  { %v4189_v45 = vpack.c.bf16 %v1209_v44, %v1205_v38  ;;  %v1244_v38 = vld [vmem:[%s4833_s5 + $0x1f8] sm:$0xff]  ;;  %v1239_v44 = vld [vmem:[%s4833_s5 + $0x1d0] sm:$0xff] }
 0x2ee   :  { %3370 = vpow2.f32 %v2574_v51  ;;  %v1214_v51 = vld [vmem:[%s4833_s5 + $0x108] sm:$0xff] }
 0x2ef   :  { %3372 = vpow2.f32 %v2573_v52  ;;  %v1218_v52 = vld [vmem:[%s4833_s5 + $0x128] sm:$0xff] }
 0x2f8   :  { %v3371_v56 = vpop.eup %3370 }
 0x2f9   :  { %v3373_v59 = vpop.eup %3372  ;;  %v914_v63 = vadd.f32 1.0, %v3371_v56  ;;  %v4199_v56 = vpack.c.bf16 %v1218_v52, %v1214_v51  ;;  %v4307_v52 = vpack.c.bf16 %v1244_v38, %v1240_v31 }
 0x2fa   :  { %v908_v7 = vadd.f32 1.0, %v3373_v59  ;;  %v1213_v59 = vld [vmem:[%s4833_s5 + $0x100] sm:$0xff] }
 0x2fb   :  { %3374 = vrcp.f32 %v914_v63  ;;  %v1217_v63 = vld [vmem:[%s4833_s5 + $0x120] sm:$0xff] }
 0x2fc   :  { %3376 = vrcp.f32 %v908_v7  ;;  %v1222_v7 = vld [vmem:[%s4833_s5 + $0x148] sm:$0xff] }
 0x305   :  { %v3375_v53 = vpop.eup %3374 }
 0x306   :  { %v3377_v62 = vpop.eup %3376  ;;  %v924_v5 = vmul.f32 %v3375_v53, %v4047_v20  ;;  %v1197_v20 = vld [vmem:[%s4833_s5 + $0x80] sm:$0xff]  ;;  %v1228_v53 = vld [vmem:[%s4833_s5 + $0x178] sm:$0xff] }
 0x307   :  { %v4171_v48 = vpack.c.bf16 %v1201_v47, %v1197_v20  ;;  %v1237_v20 = vld [vmem:[%s4833_s5 + $0x1c0] sm:$0xff] }
 0x308   :  { %v896_v14 = vpop.f32.mrb[20].mxu0  ;;  %v1241_v47 = vld [vmem:[%s4833_s5 + $0x1e0] sm:$0xff] }
 0x309   :  { %v903_v17 = vadd.f32 %v896_v14, %v372_v2  ;;  %v898_v21 = vpop.f32.mrb[21].mxu0  ;;  %v4207_v2 = vpack.c.bf16 %v1217_v63, %v1213_v59  ;;  %v4305_v51 = vpack.c.bf16 %v1241_v47, %v1237_v20  ;;  %v1243_v59 = vld [vmem:[%s4833_s5 + $0x1f0] sm:$0xff]  ;;  %v2399_v63 = vld [vmem:[%s4837_s6] sm:$0xff] }
 0x30a   :  { %v904_v24 = vadd.f32 %v898_v21, %v374_v10  ;;  %v1226_v10 = vld [vmem:[%s4833_s5 + $0x168] sm:$0xff]  ;;  %v1225_v21 = vld [vmem:[%s4833_s5 + $0x160] sm:$0xff] }
 0x30b   :  { %3378 = vtanh.f32 %v903_v17  ;;  %v4217_v14 = vpack.c.bf16 %v1226_v10, %v1222_v7  ;;  %v1221_v17 = vld [vmem:[%s4833_s5 + $0x140] sm:$0xff]  ;;  %v2400_v7 = vld [vmem:[%s4837_s6 + $0x8] sm:$0xff] }
 0x30c   :  { %v2575_v57 = vmul.f32 -1.442695, %v904_v24  ;;  %v1224_v24 = vld [vmem:[%s4833_s5 + $0x158] sm:$0xff]  ;;  %v3251_v10 = vpack.c.bf16 %v2400_v7, %v2399_v63 }
 0x30e   :  { %3380 = vpow2.f32 %v2575_v57  ;;  %v4228_v57 = vpack.c.bf16 %v1225_v21, %v1221_v17  ;;  %v4320_v17 = vpack.c.bf16 %v1243_v59, %v1239_v44 }
 0x315   :  { %v3379_v0 = vpop.eup %3378 }
 0x316   :  { %v925_v6 = vmul.f32 %v3379_v0, %v3377_v62  ;;  %v1223_v62 = vld [vmem:[%s4833_s5 + $0x150] sm:$0xff] }
 0x317   :  { %v1227_v0 = vld [vmem:[%s4833_s5 + $0x170] sm:$0xff] }
 0x318   :  { %v3381_v11 = vpop.eup %3380  ;;  %v4093_v12 = vadd.f32 %v925_v6, %v924_v5  ;;  %v4240_v5 = vpack.c.bf16 %v1228_v53, %v1224_v24  ;;  %v4242_v6 = vpack.c.bf16 %v1227_v0, %v1223_v62 }
 0x319   :  { %v921_v3 = vadd.f32 1.0, %v3381_v11  ;;  %v1230_v11 = vld [vmem:[%s4833_s5 + $0x188] sm:$0xff] }
 0x31a   :  { %3382 = vtanh.f32 %v4093_v12  ;;  %2984 = vmatprep.subr.bf16.mxu1 %v4240_v5 }
 0x31b   :  { %3384 = vrcp.f32 %v921_v3  ;;  %v1234_v3 = vld [vmem:[%s4833_s5 + $0x1a8] sm:$0xff]  ;;  %2986 = vmatpush1.bf16.msra.mxu1 %v4242_v6 }
 0x324   :  { %v3383_v55 = vpop.eup %3382 }
 0x325   :  { %v3385_v13 = vpop.eup %3384 }
 0x326   :  { %v4096_v58 = vmul.f32 %v3385_v13, %v3383_v55  ;;  %v1229_v55 = vld [vmem:[%s4833_s5 + $0x180] sm:$0xff]  ;;  %v4254_v13 = vpack.c.bf16 %v1234_v3, %v1230_v11 }
 0x328   :  { %1067 = vmatmul.mubr.f32.vlgmr.msra.gmra.mrb[6].mxu0 %v4096_v58 }
 0x329   :  { %2902 = vmatpush1.bf16.msra.mxu0 %v3835_v32  ;;  %1137 = vmatprep.mubr.f32.mxu0 %v4844_v43  ;;  %v1182_v32 = vld [vmem:[%s4833_s5 + $0x8] sm:$0xff] }
 0x32a   :  { %2904 = vmatprep.subr.bf16.mxu0 %v3837_v33  ;;  %v1186_v33 = vld [vmem:[%s4833_s5 + $0x28] sm:$0xff] }
 0x32d   :  { %2906 = vmatpush1.bf16.msra.mxu0 %v3857_v41  ;;  %v4123_v41 = vpop.f32.mrb[4].mxu1 }
 0x32e   :  { %2908 = vmatprep.subr.bf16.mxu0 %v3859_v42  ;;  %v4125_v42 = vpack.c.bf16 %v1186_v33, %v1182_v32  ;;  %v1233_v32 = vld [vmem:[%s4833_s5 + $0x1a0] sm:$0xff]  ;;  %v1232_v33 = vld [vmem:[%s4833_s5 + $0x198] sm:$0xff] }
 0x331   :  { %2910 = vmatpush1.bf16.msra.mxu0 %v3878_v49  ;;  %v1181_v49 = vld [vmem:[%s4833_s5] sm:$0xff] }
 0x332   :  { %2912 = vmatprep.subr.bf16.mxu0 %v3880_v54  ;;  %v1185_v54 = vld [vmem:[%s4833_s5 + $0x20] sm:$0xff] }
 0x335   :  { %2914 = vmatpush1.bf16.msra.mxu0 %v3899_v60  ;;  %v4133_v60 = vpop.f32.mrb[5].mxu1 }
 0x336   :  { %2916 = vmatprep.subr.bf16.mxu0 %v3901_v61  ;;  %v4135_v61 = vpack.c.bf16 %v1185_v54, %v1181_v49  ;;  %v1236_v49 = vld [vmem:[%s4833_s5 + $0x1b8] sm:$0xff]  ;;  %v4266_v54 = vpack.c.bf16 %v1233_v32, %v1229_v55 }
 0x339   :  { %2918 = vmatpush1.bf16.msra.mxu0 %v3914_v1  ;;  %v1190_v1 = vld [vmem:[%s4833_s5 + $0x48] sm:$0xff] }
 0x33a   :  { %2920 = vmatprep.subr.bf16.mxu0 %v3947_v8  ;;  %v1194_v8 = vld [vmem:[%s4833_s5 + $0x68] sm:$0xff] }
 0x33d   :  { %2922 = vmatpush1.bf16.msra.mxu0 %v3962_v15  ;;  %v4145_v15 = vpack.c.bf16 %v1194_v8, %v1190_v1  ;;  %v4268_v1 = vpack.c.bf16 %v1236_v49, %v1232_v33  ;;  %v1231_v8 = vld [vmem:[%s4833_s5 + $0x190] sm:$0xff]  ;;  %v378_v33 = vadd.f32 %v4123_v41, %v4041_v22 }
 0x33e   :  { %2924 = vmatprep.subr.bf16.mxu0 %v3965_v16  ;;  %v1189_v16 = vld [vmem:[%s4833_s5 + $0x40] sm:$0xff] }
 0x33f   :  { %2988 = vmatprep.subr.bf16.mxu1 %v4268_v1 }
 0x341   :  { %2926 = vmatpush1.bf16.msra.mxu0 %v3980_v23  ;;  %v1193_v23 = vld [vmem:[%s4833_s5 + $0x60] sm:$0xff] }
 0x342   :  { %2928 = vmatprep.subr.bf16.mxu0 %v3983_v25  ;;  %v4153_v25 = vpack.c.bf16 %v1193_v23, %v1189_v16  ;;  %v1235_v16 = vld [vmem:[%s4833_s5 + $0x1b0] sm:$0xff]  ;;  %v1238_v23 = vld [vmem:[%s4833_s5 + $0x1c8] sm:$0xff] }
 0x345   :  { %2930 = vmatpush1.bf16.msra.mxu0 %v3992_v28  ;;  %v1198_v28 = vld [vmem:[%s4833_s5 + $0x88] sm:$0xff] }
 0x346   :  { %2932 = vmatprep.subr.bf16.mxu0 %v4125_v42  ;;  %v4163_v19 = vpack.c.bf16 %v1202_v18, %v1198_v28  ;;  %v4281_v28 = vpack.c.bf16 %v1235_v16, %v1231_v8  ;;  %v1242_v18 = vld [vmem:[%s4833_s5 + $0x1e8] sm:$0xff]  ;;  %v380_v8 = vadd.f32 %v4133_v60, %v4043_v26  ;;  %v2401_v60 = vld [vmem:[%s4837_s6 + $0x10] sm:$0xff] }
 0x347   :  { %v4293_v4 = vpack.c.bf16 %v1242_v18, %v1238_v23 }
 0x348   :  { %1138 = vmatmul.mubr.f32.vlgmr.msra.gmra.mrb[22].mxu0 %v4096_v58  ;;  %2990 = vmatpush1.bf16.msra.mxu1 %v4281_v28 }
 0x349   :  { %1309 = vmatprep.mubr.f32.mxu0 %v4844_v43  ;;  %2934 = vmatpush1.bf16.msra.mxu0 %v4135_v61 }
 0x34a   :  { %2936 = vmatprep.subr.bf16.mxu0 %v4145_v15  ;;  %2992 = vmatprep.subr.bf16.mxu1 %v4307_v52 }
 0x34c   :  { %2994 = vmatpush1.bf16.msra.mxu1 %v4320_v17 }
 0x34d   :  { %2938 = vmatpush1.bf16.msra.mxu0 %v4153_v25  ;;  %2996 = vmatprep.subr.bf16.mxu1 %v4125_v42 }
 0x34e   :  { %2940 = vmatprep.subr.bf16.mxu0 %v4163_v19 }
 0x351   :  { %2942 = vmatpush1.bf16.msra.mxu0 %v4171_v48 }
 0x352   :  { %2944 = vmatprep.subr.bf16.mxu0 %v4181_v37 }
 0x355   :  { %2946 = vmatpush1.bf16.msra.mxu0 %v4189_v45 }
 0x356   :  { %2948 = vmatprep.subr.bf16.mxu0 %v4199_v56 }
 0x359   :  { %2950 = vmatpush1.bf16.msra.mxu0 %v4207_v2 }
 0x35a   :  { %2952 = vmatprep.subr.bf16.mxu0 %v4217_v14 }
 0x35d   :  { %2954 = vmatpush1.bf16.msra.mxu0 %v4228_v57 }
 0x35e   :  { %2956 = vmatprep.subr.bf16.mxu0 %v4254_v13 }
 0x361   :  { %2958 = vmatpush1.bf16.msra.mxu0 %v4266_v54 }
 0x362   :  { %2960 = vmatprep.subr.bf16.mxu0 %v4293_v4 }
 0x365   :  { %2962 = vmatpush1.bf16.msra.mxu0 %v4305_v51 }
 0x366   :  { %3252 = vmatprep.subr.bf16.mxu0 %v3251_v10 }
 0x3fb   :  { %v1068_v21 = vpop.f32.mrb[6].mxu0 }
 0x3fc   :  { %v1070_v24 = vpop.f32.mrb[7].mxu0  ;;  %v3287_v62 = vadd.f32 %v1068_v21, %v4037_v9 }
 0x3fd   :  { %v3288_v53 = vadd.f32 %v1070_v24, %v4034_v50  ;;  %v2402_v24 = vld [vmem:[%s4837_s6 + $0x18] sm:$0xff] }
 0x3fe   :  { %v2576_v11 = vmul.f32 -1.442695, %v3287_v62 }
 0x3ff   :  { %v2577_v0 = vmul.f32 -1.442695, %v3288_v53 }
 0x401   :  { %3386 = vpow2.f32 %v2577_v0 }
 0x402   :  { %3388 = vpow2.f32 %v2576_v11  ;;  %v2403_v11 = vld [vmem:[%s4837_s6 + $0x20] sm:$0xff] }
 0x40b   :  { %v3387_v3 = vpop.eup %3386 }
 0x40c   :  { %v3389_v55 = vpop.eup %3388  ;;  %v1157_v32 = vadd.f32 1.0, %v3387_v3  ;;  %v2404_v3 = vld [vmem:[%s4837_s6 + $0x28] sm:$0xff] }
 0x40d   :  { %v1151_v49 = vadd.f32 1.0, %v3389_v55  ;;  %v3259_v55 = vpack.c.bf16 %v2404_v3, %v2403_v11 }
 0x40e   :  { %3390 = vrcp.f32 %v1157_v32  ;;  %v2405_v32 = vld [vmem:[%s4837_s6 + $0x30] sm:$0xff] }
 0x40f   :  { %3392 = vrcp.f32 %v1151_v49  ;;  %v2408_v49 = vld [vmem:[%s4837_s6 + $0x48] sm:$0xff] }
 0x418   :  { %v3391_v31 = vpop.eup %3390 }
 0x419   :  { %v3393_v38 = vpop.eup %3392  ;;  %v1167_v59 = vmul.f32 %v3391_v31, %v4093_v12  ;;  %v3255_v12 = vpack.c.bf16 %v2402_v24, %v2401_v60 }
 0x41b   :  { %v1139_v16 = vpop.f32.mrb[22].mxu0 }
 0x41c   :  { %v1146_v23 = vadd.f32 %v1139_v16, %v378_v33  ;;  %v1141_v18 = vpop.f32.mrb[23].mxu0  ;;  %v2406_v33 = vld [vmem:[%s4837_s6 + $0x38] sm:$0xff]  ;;  %v2409_v16 = vld [vmem:[%s4837_s6 + $0x50] sm:$0xff] }
 0x41d   :  { %v1147_v20 = vadd.f32 %v1141_v18, %v380_v8 }
 0x41e   :  { %3394 = vtanh.f32 %v1146_v23  ;;  %v2410_v23 = vld [vmem:[%s4837_s6 + $0x58] sm:$0xff] }
 0x41f   :  { %v2578_v47 = vmul.f32 -1.442695, %v1147_v20  ;;  %v3271_v18 = vpack.c.bf16 %v2410_v23, %v2409_v16  ;;  %v2411_v20 = vld [vmem:[%s4837_s6 + $0x60] sm:$0xff] }
 0x421   :  { %3396 = vpow2.f32 %v2578_v47  ;;  %v2412_v47 = vld [vmem:[%s4837_s6 + $0x68] sm:$0xff] }
 0x422   :  { %v3275_v31 = vpack.c.bf16 %v2412_v47, %v2411_v20 }
 0x428   :  { %v3395_v44 = vpop.eup %3394 }
 0x429   :  { %v1168_v63 = vmul.f32 %v3395_v44, %v3393_v38  ;;  %v2413_v38 = vld [vmem:[%s4837_s6 + $0x70] sm:$0xff]  ;;  %v2414_v44 = vld [vmem:[%s4837_s6 + $0x78] sm:$0xff] }
 0x42b   :  { %v3397_v41 = vpop.eup %3396  ;;  %v4333_v7 = vadd.f32 %v1168_v63, %v1167_v59  ;;  %v3279_v59 = vpack.c.bf16 %v2414_v44, %v2413_v38  ;;  %v1427_v63 = vld [vmem:[%s4833_s5 + $0x18] sm:$0xff]  ;;  %v4413_v38 = vld [vmem:[%s4838_s7] ss:$0 sm:$0xff] }
 0x42c   :  { %v1164_v21 = vadd.f32 1.0, %v3397_v41  ;;  %v1431_v41 = vld [vmem:[%s4833_s5 + $0x38] sm:$0xff] }
 0x42d   :  { %3398 = vtanh.f32 %v4333_v7 }
 0x42e   :  { %3400 = vrcp.f32 %v1164_v21  ;;  %v4402_v21 = vpack.c.bf16 %v1431_v41, %v1427_v63 }
 0x437   :  { %v3399_v53 = vpop.eup %3398 }
 0x438   :  { %v3401_v62 = vpop.eup %3400 }
 0x439   :  { %v1171_v0 = vmul.f32 %v3401_v62, %v3399_v53 }
 0x43b   :  { %1310 = vmatmul.mubr.f32.vlgmr.msra.gmra.mrb[8].mxu0 %v1171_v0  ;;  %1381 = vmatmul.mubr.f32.vlgmr.msra.gmra.mrb[6].mxu1 %v1171_v0 }
 0x43c   :  { %3254 = vmatpush3.bf16.msra.mxu0 %v3251_v10  ;;  %2703 = vmatprep.mubr.f32.mxu0 %v4050_v27  ;;  %v3263_v10 = vpack.c.bf16 %v2406_v33, %v2405_v32  ;;  %v2407_v27 = vld [vmem:[%s4837_s6 + $0x40] sm:$0xff] }
 0x43d   :  { %3256 = vmatprep.subr.bf16.mxu0 %v3255_v12  ;;  %2998 = vmatpush1.bf16.msra.mxu1 %v4135_v61  ;;  %v3267_v8 = vpack.c.bf16 %v2408_v49, %v2407_v27 }
 0x43e   :  { %3000 = vmatprep.subr.bf16.mxu1 %v4145_v15  ;;  %1552 = vmatprep.mubr.f32.mxu1 %v4844_v43 }
 0x440   :  { %3258 = vmatpush3.bf16.msra.mxu0 %v3255_v12 }
 0x441   :  { %3260 = vmatprep.subr.bf16.mxu0 %v3259_v55  ;;  %3002 = vmatpush1.bf16.msra.mxu1 %v4153_v25 }
 0x442   :  { %3004 = vmatprep.subr.bf16.mxu1 %v4163_v19 }
 0x444   :  { %3262 = vmatpush3.bf16.msra.mxu0 %v3259_v55 }
 0x445   :  { %3264 = vmatprep.subr.bf16.mxu0 %v3263_v10  ;;  %3006 = vmatpush1.bf16.msra.mxu1 %v4171_v48 }
 0x446   :  { %3008 = vmatprep.subr.bf16.mxu1 %v4181_v37 }
 0x448   :  { %3266 = vmatpush3.bf16.msra.mxu0 %v3263_v10 }
 0x449   :  { %3268 = vmatprep.subr.bf16.mxu0 %v3267_v8  ;;  %3010 = vmatpush1.bf16.msra.mxu1 %v4189_v45 }
 0x44a   :  { %3012 = vmatprep.subr.bf16.mxu1 %v4199_v56 }
 0x44c   :  { %3270 = vmatpush3.bf16.msra.mxu0 %v3267_v8 }
 0x44d   :  { %3272 = vmatprep.subr.bf16.mxu0 %v3271_v18  ;;  %3014 = vmatpush1.bf16.msra.mxu1 %v4207_v2 }
 0x44e   :  { %3016 = vmatprep.subr.bf16.mxu1 %v4217_v14 }
 0x450   :  { %3274 = vmatpush3.bf16.msra.mxu0 %v3271_v18 }
 0x451   :  { %3276 = vmatprep.subr.bf16.mxu0 %v3275_v31  ;;  %3018 = vmatpush1.bf16.msra.mxu1 %v4228_v57 }
 0x452   :  { %3020 = vmatprep.subr.bf16.mxu1 %v4254_v13 }
 0x454   :  { %3278 = vmatpush3.bf16.msra.mxu0 %v3275_v31 }
 0x455   :  { %3280 = vmatprep.subr.bf16.mxu0 %v3279_v59  ;;  %3022 = vmatpush1.bf16.msra.mxu1 %v4266_v54 }
 0x456   :  { %3024 = vmatprep.subr.bf16.mxu1 %v4293_v4 }
 0x458   :  { %3282 = vmatpush3.bf16.msra.mxu0 %v3279_v59 }
 0x459   :  { %3026 = vmatpush1.bf16.msra.mxu1 %v4305_v51 }
 0x45a   :  { %3028 = vmatprep.subr.bf16.mxu1 %v4402_v21 }
 0x45b   :  { %2704 = vmatmul.mubr.f32.vlgmr.msra.gmra.mrb[24].mxu0 %v4096_v58 }
 0x45c   :  { %2706 = vmatprep.mubr.f32.mxu0 %v1171_v0 }
 0x50e   :  { %v1311_v60 = vpop.f32.mrb[8].mxu0  ;;  %v1382_v24 = vpop.f32.mrb[6].mxu1 }
 0x50f   :  { %v3289_v53 = vadd.f32 %v1311_v60, %v4037_v9  ;;  %v1313_v62 = vpop.f32.mrb[9].mxu0  ;;  %v1384_v12 = vpop.f32.mrb[7].mxu1  ;;  %v3319_v32 = vadd.f32 %v1382_v24, %v4041_v22  ;;  %v1430_v24 = vld [vmem:[%s4833_s5 + $0x30] sm:$0xff] }
 0x510   :  { %v3290_v58 = vadd.f32 %v1313_v62, %v4034_v50  ;;  %v3320_v3 = vadd.f32 %v1384_v12, %v4043_v26  ;;  %v1439_v62 = vld [vmem:[%s4833_s5 + $0x78] sm:$0xff] }
 0x511   :  { %v2579_v0 = vmul.f32 -1.442695, %v3289_v53  ;;  %v1435_v53 = vld [vmem:[%s4833_s5 + $0x58] sm:$0xff] }
 0x512   :  { %v2580_v11 = vmul.f32 -1.442695, %v3290_v58  ;;  %v2581_v55 = vmul.f32 -1.442695, %v3320_v3  ;;  %v4440_v3 = vpack.c.bf16 %v1439_v62, %v1435_v53  ;;  %v1462_v53 = vld [vmem:[%s4833_s5 + $0x130] sm:$0xff] }
 0x513   :  { %3402 = vpow2.f32 %v2579_v0 }
 0x514   :  { %3404 = vpow2.f32 %v2580_v11 }
 0x515   :  { %3406 = vpow2.f32 %v2581_v55  ;;  %v1434_v55 = vld [vmem:[%s4833_s5 + $0x50] sm:$0xff] }
 0x516   :  { %3408 = vtanh.f32 %v3319_v32  ;;  %v1438_v32 = vld [vmem:[%s4833_s5 + $0x70] sm:$0xff] }
 0x51d   :  { %v3403_v33 = vpop.eup %3402 }
 0x51e   :  { %v3405_v10 = vpop.eup %3404  ;;  %v1394_v27 = vadd.f32 1.0, %v3403_v33  ;;  %v1443_v33 = vld [vmem:[%s4833_s5 + $0x98] sm:$0xff] }
 0x51f   :  { %v1400_v49 = vadd.f32 1.0, %v3405_v10  ;;  %v3407_v8 = vpop.eup %3406  ;;  %v1447_v10 = vld [vmem:[%s4833_s5 + $0xb8] sm:$0xff] }
 0x520   :  { %3410 = vrcp.f32 %v1394_v27  ;;  %v3409_v16 = vpop.eup %3408  ;;  %v1407_v47 = vadd.f32 1.0, %v3407_v8  ;;  %v4455_v27 = vpack.c.bf16 %v1438_v32, %v1434_v55  ;;  %v1442_v8 = vld [vmem:[%s4833_s5 + $0x90] sm:$0xff] }
 0x521   :  { %3412 = vrcp.f32 %v1400_v49  ;;  %v4459_v49 = vpack.c.bf16 %v1447_v10, %v1443_v33 }
 0x522   :  { %3414 = vrcp.f32 %v1407_v47 }
 0x52a   :  { %v3411_v23 = vpop.eup %3410 }
 0x52b   :  { %v3413_v18 = vpop.eup %3412  ;;  %v1411_v20 = vmul.f32 %v3411_v23, %v3409_v16  ;;  %v1446_v16 = vld [vmem:[%s4833_s5 + $0xb0] sm:$0xff]  ;;  %v1451_v23 = vld [vmem:[%s4833_s5 + $0xd8] sm:$0xff] }
 0x52c   :  { %v1410_v31 = vmul.f32 %v3413_v18, %v4333_v7  ;;  %v1426_v7 = vld [vmem:[%s4833_s5 + $0x10] sm:$0xff]  ;;  %v3415_v12 = vpop.eup %3414  ;;  %v1455_v18 = vld [vmem:[%s4833_s5 + $0xf8] sm:$0xff] }
 0x52d   :  { %v4438_v0 = vpack.c.bf16 %v1430_v24, %v1426_v7  ;;  %v4477_v47 = vpack.c.bf16 %v1455_v18, %v1451_v23  ;;  %v1458_v24 = vld [vmem:[%s4833_s5 + $0x110] sm:$0xff] }
 0x52e   :  { %v4415_v44 = vadd.f32 %v1411_v20, %v1410_v31  ;;  %v2705_v59 = vpop.f32.mrb[24].mxu0  ;;  %v4474_v20 = vpack.c.bf16 %v1446_v16, %v1442_v8  ;;  %v1450_v31 = vld [vmem:[%s4833_s5 + $0xd0] sm:$0xff]  ;;  %v4504_v62 = vpack.c.bf16 %v1462_v53, %v1458_v24 }
 0x52f   :  { %v2494_v63 = vadd.f32 %v2705_v59, %v4413_v38  ;;  %v2488_v41 = vpop.f32.mrb[25].mxu0  ;;  %v1454_v59 = vld [vmem:[%s4833_s5 + $0xf0] sm:$0xff] }
 0x530   :  { %v2489_v60 = vadd.f32 %v4413_v38, %v2488_v41  ;;  %3416 = vtanh.f32 %v4415_v44  ;;  %v1463_v41 = vld [vmem:[%s4833_s5 + $0x138] sm:$0xff] }
 0x531   :  { %2528 = vst [vmem:[%s4839_s8 + $0x8] sm:$0xff] %v2494_v63  ;;  %v1459_v63 = vld [vmem:[%s4833_s5 + $0x118] sm:$0xff] }
 0x532   :  { %2527 = vst [vmem:[%s4839_s8] sm:$0xff] %v2489_v60  ;;  %v4492_v60 = vpack.c.bf16 %v1454_v59, %v1450_v31  ;;  %v4495_v7 = vpack.c.bf16 %v1463_v41, %v1459_v63 }
 0x53a   :  { %v3417_v58 = vpop.eup %3416 }
 0x53b   :  { %v1414_v11 = vmul.f32 %v3417_v58, %v3415_v12 }
 0x53d   :  { %1553 = vmatmul.mubr.f32.vlgmr.msra.gmra.mrb[16].mxu1 %v1414_v11  ;;  %2707 = vmatmul.mubr.f32.gmra.mrb[26].mxu0 %v1414_v11 }
 0x53e   :  { %3030 = vmatpush1.bf16.msra.mxu1 %v4438_v0  ;;  %1623 = vmatprep.mubr.f32.mxu1 %v4844_v43 }
 0x53f   :  { %3032 = vmatprep.subr.bf16.mxu1 %v4440_v3 }
 0x542   :  { %3034 = vmatpush1.bf16.msra.mxu1 %v4455_v27 }
 0x543   :  { %3036 = vmatprep.subr.bf16.mxu1 %v4459_v49 }
 0x546   :  { %3038 = vmatpush1.bf16.msra.mxu1 %v4474_v20 }
 0x547   :  { %3040 = vmatprep.subr.bf16.mxu1 %v4477_v47 }
 0x54a   :  { %3042 = vmatpush1.bf16.msra.mxu1 %v4492_v60 }
 0x54b   :  { %3044 = vmatprep.subr.bf16.mxu1 %v4495_v7 }
 0x54e   :  { %3046 = vmatpush1.bf16.msra.mxu1 %v4504_v62 }
 0x54f   :  { %3048 = vmatprep.subr.bf16.mxu1 %v4240_v5 }
 0x552   :  { %3050 = vmatpush1.bf16.msra.mxu1 %v4242_v6 }
 0x553   :  { %3052 = vmatprep.subr.bf16.mxu1 %v4268_v1 }
 0x556   :  { %3054 = vmatpush1.bf16.msra.mxu1 %v4281_v28 }
 0x557   :  { %3056 = vmatprep.subr.bf16.mxu1 %v4307_v52 }
 0x55a   :  { %3058 = vmatpush1.bf16.msra.mxu1 %v4320_v17 }
 0x55b   :  { %3060 = vmatprep.subr.bf16.mxu1 %v4125_v42  ;;  %v277_v42 = vadd.f32 %v4015_v29, %v4037_v9 }
 0x55d   :  { %1624 = vmatmul.mubr.f32.vlgmr.msra.gmra.mrb[8].mxu1 %v1414_v11 }
 0x55e   :  { %3062 = vmatpush1.bf16.msra.mxu1 %v4135_v61  ;;  %1795 = vmatprep.mubr.f32.mxu1 %v4844_v43  ;;  %v279_v61 = vadd.f32 %v4017_v30, %v4034_v50 }
 0x55f   :  { %3064 = vmatprep.subr.bf16.mxu1 %v4145_v15 }
 0x562   :  { %3066 = vmatpush1.bf16.msra.mxu1 %v4153_v25 }
 0x563   :  { %3068 = vmatprep.subr.bf16.mxu1 %v4163_v19 }
 0x566   :  { %3070 = vmatpush1.bf16.msra.mxu1 %v4171_v48 }
 0x567   :  { %3072 = vmatprep.subr.bf16.mxu1 %v4181_v37 }
 0x56a   :  { %3074 = vmatpush1.bf16.msra.mxu1 %v4189_v45 }
 0x56b   :  { %3076 = vmatprep.subr.bf16.mxu1 %v4199_v56 }
 0x56e   :  { %3078 = vmatpush1.bf16.msra.mxu1 %v4207_v2 }
 0x56f   :  { %3080 = vmatprep.subr.bf16.mxu1 %v4217_v14 }
 0x572   :  { %3082 = vmatpush1.bf16.msra.mxu1 %v4228_v57 }
 0x573   :  { %3084 = vmatprep.subr.bf16.mxu1 %v4254_v13 }
 0x576   :  { %3086 = vmatpush1.bf16.msra.mxu1 %v4266_v54 }
 0x577   :  { %3088 = vmatprep.subr.bf16.mxu1 %v4293_v4 }
 0x57a   :  { %3090 = vmatpush1.bf16.msra.mxu1 %v4305_v51 }
 0x57b   :  { %3092 = vmatprep.subr.bf16.mxu1 %v4402_v21 }
 0x610   :  { %v1554_v15 = vpop.f32.mrb[16].mxu1  ;;  %v2708_v25 = vpop.f32.mrb[26].mxu0 }
 0x611   :  { %v1630_v19 = vadd.f32 %v1554_v15, %v277_v42  ;;  %v2504_v48 = vadd.f32 %v2708_v25, %v4413_v38  ;;  %v1556_v37 = vpop.f32.mrb[17].mxu1  ;;  %v2498_v45 = vpop.f32.mrb[27].mxu0 }
 0x612   :  { %v1631_v12 = vadd.f32 %v1556_v37, %v279_v61  ;;  %v2499_v58 = vadd.f32 %v4413_v38, %v2498_v45  ;;  %v1918_v45 = vld [vmem:[%s4833_s5 + $0x40] sm:$0xff] }
 0x613   :  { %2530 = vst [vmem:[%s4839_s8 + $0x18] sm:$0xff] %v2504_v48  ;;  %v2582_v30 = vmul.f32 -1.442695, %v1630_v19  ;;  %v1923_v48 = vld [vmem:[%s4833_s5 + $0x68] sm:$0xff] }
 0x614   :  { %2529 = vst [vmem:[%s4839_s8 + $0x10] sm:$0xff] %v2499_v58  ;;  %v2583_v29 = vmul.f32 -1.442695, %v1631_v12  ;;  %v1922_v12 = vld [vmem:[%s4833_s5 + $0x60] sm:$0xff] }
 0x615   :  { %v4599_v58 = vpack.c.bf16 %v1922_v12, %v1918_v45 }
 0x616   :  { %3418 = vpow2.f32 %v2583_v29  ;;  %v1927_v29 = vld [vmem:[%s4833_s5 + $0x88] sm:$0xff] }
 0x617   :  { %3420 = vpow2.f32 %v2582_v30  ;;  %v1931_v30 = vld [vmem:[%s4833_s5 + $0xa8] sm:$0xff] }
 0x620   :  { %v3419_v11 = vpop.eup %3418 }
 0x621   :  { %v3421_v55 = vpop.eup %3420  ;;  %v1643_v32 = vadd.f32 1.0, %v3419_v11  ;;  %v4609_v11 = vpack.c.bf16 %v1931_v30, %v1927_v29  ;;  %v1957_v30 = vld [vmem:[%s4833_s5 + $0x178] sm:$0xff] }
 0x622   :  { %v1637_v33 = vadd.f32 1.0, %v3421_v55  ;;  %v1926_v55 = vld [vmem:[%s4833_s5 + $0x80] sm:$0xff] }
 0x623   :  { %3422 = vrcp.f32 %v1643_v32  ;;  %v1930_v32 = vld [vmem:[%s4833_s5 + $0xa0] sm:$0xff] }
 0x624   :  { %3424 = vrcp.f32 %v1637_v33  ;;  %v4617_v33 = vpack.c.bf16 %v1930_v32, %v1926_v55  ;;  %v1952_v32 = vld [vmem:[%s4833_s5 + $0x150] sm:$0xff] }
 0x62d   :  { %v3423_v31 = vpop.eup %3422 }
 0x62e   :  { %v3425_v59 = vpop.eup %3424  ;;  %v1653_v41 = vmul.f32 %v3423_v31, %v4415_v44  ;;  %v1911_v44 = vld [vmem:[%s4833_s5 + $0x8] sm:$0xff] }
 0x630   :  { %v1625_v10 = vpop.f32.mrb[8].mxu1 }
 0x631   :  { %v3321_v8 = vadd.f32 %v1625_v10, %v4041_v22  ;;  %v1627_v16 = vpop.f32.mrb[9].mxu1  ;;  %v1935_v10 = vld [vmem:[%s4833_s5 + $0xc8] sm:$0xff] }
 0x632   :  { %v3322_v23 = vadd.f32 %v1627_v16, %v4043_v26 }
 0x633   :  { %3426 = vtanh.f32 %v3321_v8  ;;  %v1939_v8 = vld [vmem:[%s4833_s5 + $0xe8] sm:$0xff] }
 0x634   :  { %v2584_v18 = vmul.f32 -1.442695, %v3322_v23  ;;  %v4627_v16 = vpack.c.bf16 %v1939_v8, %v1935_v10  ;;  %v1934_v23 = vld [vmem:[%s4833_s5 + $0xc0] sm:$0xff]  ;;  %v1956_v10 = vld [vmem:[%s4833_s5 + $0x170] sm:$0xff]  ;;  %v1961_v8 = vld [vmem:[%s4833_s5 + $0x198] sm:$0xff] }
 0x636   :  { %3428 = vpow2.f32 %v2584_v18  ;;  %v1938_v18 = vld [vmem:[%s4833_s5 + $0xe0] sm:$0xff] }
 0x637   :  { %v4635_v31 = vpack.c.bf16 %v1938_v18, %v1934_v23  ;;  %v1965_v23 = vld [vmem:[%s4833_s5 + $0x1b8] sm:$0xff]  ;;  %v4688_v18 = vpack.c.bf16 %v1956_v10, %v1952_v32 }
 0x63d   :  { %v3427_v63 = vpop.eup %3426 }
 0x63e   :  { %v1654_v24 = vmul.f32 %v3427_v63, %v3425_v59  ;;  %v283_v59 = vadd.f32 %v4019_v34, %v4037_v9 }
 0x640   :  { %v3429_v53 = vpop.eup %3428  ;;  %v4547_v42 = vadd.f32 %v1654_v24, %v1653_v41 }
 0x641   :  { %v1650_v61 = vadd.f32 1.0, %v3429_v53 }
 0x642   :  { %3430 = vtanh.f32 %v4547_v42 }
 0x643   :  { %3432 = vrcp.f32 %v1650_v61 }
 0x64c   :  { %v3431_v15 = vpop.eup %3430 }
 0x64d   :  { %v3433_v25 = vpop.eup %3432 }
 0x64e   :  { %v1657_v19 = vmul.f32 %v3433_v25, %v3431_v15 }
 0x650   :  { %1796 = vmatmul.mubr.f32.vlgmr.msra.gmra.mrb[18].mxu1 %v1657_v19  ;;  %2709 = vmatprep.mubr.f32.mxu0 %v1657_v19 }
 0x651   :  { %3094 = vmatpush1.bf16.msra.mxu1 %v4438_v0  ;;  %1866 = vmatprep.mubr.f32.mxu1 %v4844_v43 }
 0x652   :  { %3096 = vmatprep.subr.bf16.mxu1 %v4440_v3 }
 0x655   :  { %3098 = vmatpush1.bf16.msra.mxu1 %v4455_v27 }
 0x656   :  { %3100 = vmatprep.subr.bf16.mxu1 %v4459_v49 }
 0x659   :  { %3102 = vmatpush1.bf16.msra.mxu1 %v4474_v20 }
 0x65a   :  { %3104 = vmatprep.subr.bf16.mxu1 %v4477_v47 }
 0x65d   :  { %3106 = vmatpush1.bf16.msra.mxu1 %v4492_v60 }
 0x65e   :  { %3108 = vmatprep.subr.bf16.mxu1 %v4495_v7 }
 0x661   :  { %3110 = vmatpush1.bf16.msra.mxu1 %v4504_v62 }
 0x662   :  { %3112 = vmatprep.subr.bf16.mxu1 %v4240_v5  ;;  %v1915_v5 = vld [vmem:[%s4833_s5 + $0x28] sm:$0xff] }
 0x665   :  { %3114 = vmatpush1.bf16.msra.mxu1 %v4242_v6  ;;  %v4573_v6 = vpack.c.bf16 %v1915_v5, %v1911_v44 }
 0x666   :  { %3116 = vmatprep.subr.bf16.mxu1 %v4268_v1  ;;  %v1910_v1 = vld [vmem:[%s4833_s5] sm:$0xff] }
 0x669   :  { %3118 = vmatpush1.bf16.msra.mxu1 %v4281_v28  ;;  %v1914_v28 = vld [vmem:[%s4833_s5 + $0x20] sm:$0xff] }
 0x66a   :  { %3120 = vmatprep.subr.bf16.mxu1 %v4307_v52  ;;  %v4581_v52 = vpack.c.bf16 %v1914_v28, %v1910_v1 }
 0x66d   :  { %3122 = vmatpush1.bf16.msra.mxu1 %v4320_v17  ;;  %v1919_v17 = vld [vmem:[%s4833_s5 + $0x48] sm:$0xff] }
 0x66e   :  { %3124 = vmatprep.subr.bf16.mxu1 %v4573_v6  ;;  %v4591_v37 = vpack.c.bf16 %v1923_v48, %v1919_v17 }
 0x670   :  { %1867 = vmatmul.mubr.f32.vlgmr.msra.gmra.mrb[10].mxu1 %v1657_v19 }
 0x671   :  { %2038 = vmatprep.mubr.f32.mxu1 %v4844_v43  ;;  %3126 = vmatpush1.bf16.msra.mxu1 %v4581_v52 }
 0x672   :  { %3128 = vmatprep.subr.bf16.mxu1 %v4591_v37 }
 0x675   :  { %3130 = vmatpush1.bf16.msra.mxu1 %v4599_v58 }
 0x676   :  { %3132 = vmatprep.subr.bf16.mxu1 %v4609_v11 }
 0x679   :  { %3134 = vmatpush1.bf16.msra.mxu1 %v4617_v33 }
 0x67a   :  { %3136 = vmatprep.subr.bf16.mxu1 %v4627_v16 }
 0x67d   :  { %3138 = vmatpush1.bf16.msra.mxu1 %v4635_v31 }
 0x67e   :  { %3140 = vmatprep.subr.bf16.mxu1 %v4199_v56  ;;  %v285_v56 = vadd.f32 %v4021_v35, %v4034_v50 }
 0x681   :  { %3142 = vmatpush1.bf16.msra.mxu1 %v4207_v2 }
 0x682   :  { %3144 = vmatprep.subr.bf16.mxu1 %v4217_v14 }
 0x685   :  { %3146 = vmatpush1.bf16.msra.mxu1 %v4228_v57 }
 0x686   :  { %3148 = vmatprep.subr.bf16.mxu1 %v4254_v13 }
 0x689   :  { %3150 = vmatpush1.bf16.msra.mxu1 %v4266_v54 }
 0x68a   :  { %3152 = vmatprep.subr.bf16.mxu1 %v4293_v4 }
 0x68d   :  { %3154 = vmatpush1.bf16.msra.mxu1 %v4305_v51 }
 0x68e   :  { %3156 = vmatprep.subr.bf16.mxu1 %v4402_v21 }
 0x723   :  { %v1797_v2 = vpop.f32.mrb[18].mxu1 }
 0x724   :  { %v1873_v14 = vadd.f32 %v1797_v2, %v283_v59  ;;  %v1799_v63 = vpop.f32.mrb[19].mxu1  ;;  %v4691_v59 = vpack.c.bf16 %v1965_v23, %v1961_v8  ;;  %v1964_v2 = vld [vmem:[%s4833_s5 + $0x1b0] sm:$0xff] }
 0x725   :  { %v1874_v57 = vadd.f32 %v1799_v63, %v285_v56  ;;  %v1960_v56 = vld [vmem:[%s4833_s5 + $0x190] sm:$0xff]  ;;  %v1973_v63 = vld [vmem:[%s4833_s5 + $0x1f8] sm:$0xff] }
 0x726   :  { %v2585_v13 = vmul.f32 -1.442695, %v1873_v14  ;;  %v1969_v14 = vld [vmem:[%s4833_s5 + $0x1d8] sm:$0xff] }
 0x727   :  { %v2586_v41 = vmul.f32 -1.442695, %v1874_v57  ;;  %v4706_v57 = vpack.c.bf16 %v1964_v2, %v1960_v56 }
 0x729   :  { %3434 = vpow2.f32 %v2586_v41  ;;  %v4709_v41 = vpack.c.bf16 %v1973_v63, %v1969_v14 }
 0x72a   :  { %3436 = vpow2.f32 %v2585_v13  ;;  %v1968_v13 = vld [vmem:[%s4833_s5 + $0x1d0] sm:$0xff] }
 0x733   :  { %v3435_v54 = vpop.eup %3434 }
 0x734   :  { %v3437_v4 = vpop.eup %3436  ;;  %v1886_v24 = vadd.f32 1.0, %v3435_v54  ;;  %v1972_v54 = vld [vmem:[%s4833_s5 + $0x1f0] sm:$0xff] }
 0x735   :  { %v1880_v51 = vadd.f32 1.0, %v3437_v4  ;;  %v4718_v4 = vpack.c.bf16 %v1972_v54, %v1968_v13 }
 0x736   :  { %3438 = vrcp.f32 %v1886_v24 }
 0x737   :  { %3440 = vrcp.f32 %v1880_v51  ;;  %v2193_v51 = vld [vmem:[%s4833_s5 + $0x140] sm:$0xff] }
 0x740   :  { %v3439_v25 = vpop.eup %3438 }
 0x741   :  { %v3441_v19 = vpop.eup %3440  ;;  %v1896_v5 = vmul.f32 %v3439_v25, %v4547_v42  ;;  %v1953_v42 = vld [vmem:[%s4833_s5 + $0x158] sm:$0xff] }
 0x742   :  { %v4673_v55 = vpack.c.bf16 %v1957_v30, %v1953_v42  ;;  %v291_v42 = vadd.f32 %v4025_v40, %v4034_v50 }
 0x743   :  { %v1868_v53 = vpop.f32.mrb[10].mxu1 }
 0x744   :  { %v3323_v61 = vadd.f32 %v1868_v53, %v4041_v22  ;;  %v1870_v34 = vpop.f32.mrb[11].mxu1  ;;  %v2197_v53 = vld [vmem:[%s4833_s5 + $0x160] sm:$0xff] }
 0x745   :  { %v3324_v35 = vadd.f32 %v1870_v34, %v4043_v26  ;;  %v2202_v34 = vld [vmem:[%s4833_s5 + $0x188] sm:$0xff] }
 0x746   :  { %3442 = vtanh.f32 %v3323_v61  ;;  %v3209_v61 = vpack.c.bf16 %v2197_v53, %v2193_v51 }
 0x747   :  { %v2587_v15 = vmul.f32 -1.442695, %v3324_v35  ;;  %v2206_v35 = vld [vmem:[%s4833_s5 + $0x1a8] sm:$0xff] }
 0x748   :  { %v3211_v25 = vpack.c.bf16 %v2206_v35, %v2202_v34 }
 0x749   :  { %3444 = vpow2.f32 %v2587_v15  ;;  %v2201_v15 = vld [vmem:[%s4833_s5 + $0x180] sm:$0xff] }
 0x750   :  { %v3443_v44 = vpop.eup %3442 }
 0x751   :  { %v1897_v1 = vmul.f32 %v3443_v44, %v3441_v19  ;;  %v2205_v19 = vld [vmem:[%s4833_s5 + $0x1a0] sm:$0xff]  ;;  %v2210_v44 = vld [vmem:[%s4833_s5 + $0x1c8] sm:$0xff] }
 0x753   :  { %v3445_v28 = vpop.eup %3444  ;;  %v4655_v17 = vadd.f32 %v1897_v1, %v1896_v5  ;;  %v2214_v5 = vld [vmem:[%s4833_s5 + $0x1e8] sm:$0xff]  ;;  %v3213_v1 = vpack.c.bf16 %v2205_v19, %v2201_v15 }
 0x754   :  { %v1893_v48 = vadd.f32 1.0, %v3445_v28  ;;  %v3215_v28 = vpack.c.bf16 %v2214_v5, %v2210_v44 }
 0x755   :  { %3446 = vtanh.f32 %v4655_v17 }
 0x756   :  { %3448 = vrcp.f32 %v1893_v48  ;;  %v2209_v48 = vld [vmem:[%s4833_s5 + $0x1c0] sm:$0xff] }
 0x75f   :  { %v3447_v45 = vpop.eup %3446 }
 0x760   :  { %v3449_v12 = vpop.eup %3448 }
 0x761   :  { %v1900_v29 = vmul.f32 %v3449_v12, %v3447_v45  ;;  %v2213_v45 = vld [vmem:[%s4833_s5 + $0x1e0] sm:$0xff] }
 0x762   :  { %v3217_v12 = vpack.c.bf16 %v2213_v45, %v2209_v48 }
 0x763   :  { %2039 = vmatmul.mubr.f32.vlgmr.msra.gmra.mrb[20].mxu1 %v1900_v29  ;;  %2710 = vmatmul.mubr.f32.gmra.mrb[28].mxu0 %v1900_v29 }
 0x764   :  { %3158 = vmatpush1.bf16.msra.mxu1 %v4438_v0  ;;  %2109 = vmatprep.mubr.f32.mxu1 %v4844_v43 }
 0x765   :  { %3160 = vmatprep.subr.bf16.mxu1 %v4440_v3 }
 0x768   :  { %3162 = vmatpush1.bf16.msra.mxu1 %v4455_v27 }
 0x769   :  { %3164 = vmatprep.subr.bf16.mxu1 %v4459_v49 }
 0x76c   :  { %3166 = vmatpush1.bf16.msra.mxu1 %v4474_v20 }
 0x76d   :  { %3168 = vmatprep.subr.bf16.mxu1 %v4477_v47 }
 0x770   :  { %3170 = vmatpush1.bf16.msra.mxu1 %v4492_v60 }
 0x771   :  { %3172 = vmatprep.subr.bf16.mxu1 %v4495_v7 }
 0x774   :  { %3174 = vmatpush1.bf16.msra.mxu1 %v4504_v62 }
 0x775   :  { %3176 = vmatprep.subr.bf16.mxu1 %v4673_v55 }
 0x778   :  { %3178 = vmatpush1.bf16.msra.mxu1 %v4688_v18 }
 0x779   :  { %3180 = vmatprep.subr.bf16.mxu1 %v4691_v59 }
 0x77c   :  { %3182 = vmatpush1.bf16.msra.mxu1 %v4706_v57 }
 0x77d   :  { %3184 = vmatprep.subr.bf16.mxu1 %v4709_v41 }
 0x780   :  { %3186 = vmatpush1.bf16.msra.mxu1 %v4718_v4 }
 0x781   :  { %3188 = vmatprep.subr.bf16.mxu1 %v4573_v6  ;;  %v2186_v6 = vld [vmem:[%s4833_s5 + $0x108] sm:$0xff] }
 0x783   :  { %2110 = vmatmul.mubr.f32.vlgmr.msra.gmra.mrb[12].mxu1 %v1900_v29  ;;  %v289_v29 = vadd.f32 %v4023_v39, %v4037_v9 }
 0x784   :  { %3190 = vmatpush1.bf16.msra.mxu1 %v4581_v52  ;;  %2281 = vmatprep.mubr.f32.mxu1 %v4844_v43  ;;  %v2190_v52 = vld [vmem:[%s4833_s5 + $0x128] sm:$0xff] }
 0x785   :  { %3192 = vmatprep.subr.bf16.mxu1 %v4591_v37  ;;  %v3203_v24 = vpack.c.bf16 %v2190_v52, %v2186_v6  ;;  %v2185_v37 = vld [vmem:[%s4833_s5 + $0x100] sm:$0xff] }
 0x788   :  { %3194 = vmatpush1.bf16.msra.mxu1 %v4599_v58  ;;  %v2189_v58 = vld [vmem:[%s4833_s5 + $0x120] sm:$0xff] }
 0x789   :  { %3196 = vmatprep.subr.bf16.mxu1 %v4609_v11  ;;  %v3205_v11 = vpack.c.bf16 %v2189_v58, %v2185_v37 }
 0x78c   :  { %3198 = vmatpush1.bf16.msra.mxu1 %v4617_v33  ;;  %v2194_v33 = vld [vmem:[%s4833_s5 + $0x148] sm:$0xff] }
 0x78d   :  { %3200 = vmatprep.subr.bf16.mxu1 %v4627_v16  ;;  %v2198_v16 = vld [vmem:[%s4833_s5 + $0x168] sm:$0xff] }
 0x790   :  { %3202 = vmatpush1.bf16.msra.mxu1 %v4635_v31  ;;  %v3207_v31 = vpack.c.bf16 %v2198_v16, %v2194_v33 }
 0x791   :  { %3204 = vmatprep.subr.bf16.mxu1 %v3203_v24 }
 0x794   :  { %3206 = vmatpush1.bf16.msra.mxu1 %v3205_v11 }
 0x795   :  { %3208 = vmatprep.subr.bf16.mxu1 %v3207_v31 }
 0x798   :  { %3210 = vmatpush1.bf16.msra.mxu1 %v3209_v61 }
 0x799   :  { %3212 = vmatprep.subr.bf16.mxu1 %v3211_v25 }
 0x79c   :  { %3214 = vmatpush1.bf16.msra.mxu1 %v3213_v1 }
 0x79d   :  { %3216 = vmatprep.subr.bf16.mxu1 %v3215_v28 }
 0x7a0   :  { %3218 = vmatpush1.bf16.msra.mxu1 %v3217_v12 }
 0x7a1   :  { %3220 = vmatprep.subr.bf16.mxu1 %v4402_v21 }
 0x836   :  { %v2040_v30 = vpop.f32.mrb[20].mxu1  ;;  %v2711_v32 = vpop.f32.mrb[28].mxu0 }
 0x837   :  { %v2116_v10 = vadd.f32 %v2040_v30, %v289_v29  ;;  %v2514_v8 = vadd.f32 %v2711_v32, %v4413_v38  ;;  %v2042_v23 = vpop.f32.mrb[21].mxu1  ;;  %v2508_v56 = vpop.f32.mrb[29].mxu0 }
 0x838   :  { %v2117_v2 = vadd.f32 %v2042_v23, %v291_v42  ;;  %v2509_v14 = vadd.f32 %v4413_v38, %v2508_v56 }
 0x839   :  { %2532 = vst [vmem:[%s4839_s8 + $0x28] sm:$0xff] %v2514_v8  ;;  %v2588_v40 = vmul.f32 -1.442695, %v2116_v10 }
 0x83a   :  { %2531 = vst [vmem:[%s4839_s8 + $0x20] sm:$0xff] %v2509_v14  ;;  %v2589_v39 = vmul.f32 -1.442695, %v2117_v2 }
 0x83c   :  { %3450 = vpow2.f32 %v2589_v39 }
 0x83d   :  { %3452 = vpow2.f32 %v2588_v40 }
 0x846   :  { %v3451_v21 = vpop.eup %3450 }
 0x847   :  { %v3453_v63 = vpop.eup %3452  ;;  %v2129_v13 = vadd.f32 1.0, %v3451_v21 }
 0x848   :  { %v2123_v54 = vadd.f32 1.0, %v3453_v63 }
 0x849   :  { %3454 = vrcp.f32 %v2129_v13 }
 0x84a   :  { %3456 = vrcp.f32 %v2123_v54 }
 0x853   :  { %v3455_v11 = vpop.eup %3454 }
 0x854   :  { %v3457_v33 = vpop.eup %3456  ;;  %v2139_v31 = vmul.f32 %v3455_v11, %v4655_v17 }
 0x856   :  { %v2111_v6 = vpop.f32.mrb[12].mxu1 }
 0x857   :  { %v3325_v52 = vadd.f32 %v2111_v6, %v4041_v22  ;;  %v2113_v24 = vpop.f32.mrb[13].mxu1 }
 0x858   :  { %v3326_v37 = vadd.f32 %v2113_v24, %v4043_v26 }
 0x859   :  { %3458 = vtanh.f32 %v3325_v52 }
 0x85a   :  { %v2590_v58 = vmul.f32 -1.442695, %v3326_v37 }
 0x85c   :  { %3460 = vpow2.f32 %v2590_v58 }
 0x863   :  { %v3459_v16 = vpop.eup %3458 }
 0x864   :  { %v2140_v51 = vmul.f32 %v3459_v16, %v3457_v33 }
 0x866   :  { %v3461_v53 = vpop.eup %3460  ;;  %v2141_v61 = vadd.f32 %v2140_v51, %v2139_v31 }
 0x867   :  { %v2136_v34 = vadd.f32 1.0, %v3461_v53 }
 0x868   :  { %3462 = vtanh.f32 %v2141_v61 }
 0x869   :  { %3464 = vrcp.f32 %v2136_v34 }
 0x872   :  { %v3463_v35 = vpop.eup %3462 }
 0x873   :  { %v3465_v15 = vpop.eup %3464 }
 0x874   :  { %v2143_v25 = vmul.f32 %v3465_v15, %v3463_v35 }
 0x876   :  { %2282 = vmatmul.mubr.f32.vlgmr.msra.gmra.mrb[22].mxu1 %v2143_v25  ;;  %2712 = vmatprep.mubr.f32.mxu0 %v2143_v25 }
 0x877   :  { %3222 = vmatpush1.bf16.msra.mxu1 %v4438_v0  ;;  %2352 = vmatprep.mubr.f32.mxu1 %v4844_v43  ;;  %v295_v43 = vadd.f32 %v4027_v36, %v4037_v9  ;;  %v297_v0 = vadd.f32 %v4029_v46, %v4034_v50 }
 0x878   :  { %3224 = vmatprep.subr.bf16.mxu1 %v4440_v3 }
 0x87b   :  { %3226 = vmatpush1.bf16.msra.mxu1 %v4455_v27 }
 0x87c   :  { %3228 = vmatprep.subr.bf16.mxu1 %v4459_v49 }
 0x87f   :  { %3230 = vmatpush1.bf16.msra.mxu1 %v4474_v20 }
 0x880   :  { %3232 = vmatprep.subr.bf16.mxu1 %v4477_v47 }
 0x883   :  { %3234 = vmatpush1.bf16.msra.mxu1 %v4492_v60 }
 0x884   :  { %3236 = vmatprep.subr.bf16.mxu1 %v4495_v7 }
 0x887   :  { %3238 = vmatpush1.bf16.msra.mxu1 %v4504_v62 }
 0x888   :  { %3240 = vmatprep.subr.bf16.mxu1 %v4673_v55 }
 0x88b   :  { %3242 = vmatpush1.bf16.msra.mxu1 %v4688_v18 }
 0x88c   :  { %3244 = vmatprep.subr.bf16.mxu1 %v4691_v59 }
 0x88f   :  { %3246 = vmatpush1.bf16.msra.mxu1 %v4706_v57 }
 0x890   :  { %3248 = vmatprep.subr.bf16.mxu1 %v4709_v41 }
 0x893   :  { %3250 = vmatpush1.bf16.msra.mxu1 %v4718_v4 }
 0x896   :  { %2353 = vmatmul.mubr.f32.vlgmr.msra.gmra.mrb[14].mxu1 %v2143_v25 }
 0x949   :  { %v2283_v3 = vpop.f32.mrb[22].mxu1 }
 0x94a   :  { %v2359_v27 = vadd.f32 %v2283_v3, %v295_v43  ;;  %v2285_v49 = vpop.f32.mrb[23].mxu1 }
 0x94b   :  { %v2360_v20 = vadd.f32 %v2285_v49, %v297_v0 }
 0x94c   :  { %v2591_v60 = vmul.f32 -1.442695, %v2359_v27 }
 0x94d   :  { %v2592_v47 = vmul.f32 -1.442695, %v2360_v20 }
 0x94f   :  { %3466 = vpow2.f32 %v2592_v47 }
 0x950   :  { %3468 = vpow2.f32 %v2591_v60 }
 0x959   :  { %v3467_v7 = vpop.eup %3466 }
 0x95a   :  { %v3469_v62 = vpop.eup %3468  ;;  %v2372_v17 = vadd.f32 1.0, %v3467_v7 }
 0x95b   :  { %v2366_v55 = vadd.f32 1.0, %v3469_v62 }
 0x95c   :  { %3470 = vrcp.f32 %v2372_v17 }
 0x95d   :  { %3472 = vrcp.f32 %v2366_v55 }
 0x966   :  { %v3471_v9 = vpop.eup %3470 }
 0x967   :  { %v3473_v57 = vpop.eup %3472  ;;  %v2382_v4 = vmul.f32 %v3471_v9, %v2141_v61 }
 0x969   :  { %v2354_v18 = vpop.f32.mrb[14].mxu1 }
 0x96a   :  { %v3327_v59 = vadd.f32 %v2354_v18, %v4041_v22  ;;  %v2356_v36 = vpop.f32.mrb[15].mxu1 }
 0x96b   :  { %v3328_v46 = vadd.f32 %v2356_v36, %v4043_v26 }
 0x96c   :  { %3474 = vtanh.f32 %v3327_v59 }
 0x96d   :  { %v2593_v50 = vmul.f32 -1.442695, %v3328_v46 }
 0x96f   :  { %3476 = vpow2.f32 %v2593_v50 }
 0x976   :  { %v3475_v41 = vpop.eup %3474 }
 0x977   :  { %v2383_v19 = vmul.f32 %v3475_v41, %v3473_v57 }
 0x979   :  { %v3477_v44 = vpop.eup %3476  ;;  %v2384_v5 = vadd.f32 %v2383_v19, %v2382_v4 }
 0x97a   :  { %v2379_v1 = vadd.f32 1.0, %v3477_v44 }
 0x97b   :  { %2390 = vst [vmem:[%s4840_s10] sm:$0xff] %v2384_v5  ;;  %3478 = vtanh.f32 %v2384_v5 }
 0x97c   :  { %3480 = vrcp.f32 %v2379_v1 }
 0x985   :  { %v3479_v22 = vpop.eup %3478 }
 0x986   :  { %v3481_v28 = vpop.eup %3480 }
 0x987   :  { %v2386_v26 = vmul.f32 %v3481_v28, %v3479_v22 }
 0x989   :  { %2389 = vst [vmem:[%s4841_s9] sm:$0xff] %v2386_v26  ;;  %2713 = vmatmul.mubr.f32.gmra.mrb[30].mxu0 %v2386_v26 }
 0xa5c   :  { %v2714_v48 = vpop.f32.mrb[30].mxu0 }
 0xa5d   :  { %v2524_v45 = vadd.f32 %v2714_v48, %v4413_v38  ;;  %v2518_v12 = vpop.f32.mrb[31].mxu0 }
 0xa5e   :  { %v2519_v29 = vadd.f32 %v4413_v38, %v2518_v12 }
 0xa5f   :  { %2534 = vst [vmem:[%s4839_s8 + $0x38] sm:$0xff] %v2524_v45 }
 0xa60   :  { %2533 = vst [vmem:[%s4839_s8 + $0x30] sm:$0xff] %v2519_v29 }

</bundles_post_ra>
